<compile_context>
chip_gen: v7x
topology: tpu7x:2x2x1
jax: 0.10.0
libtpu: 0.0.40
codegen_flags: <defaults>
</compile_context>

<pallas_src>
import numpy as np
import jax
import jax.numpy as jnp
from jax.experimental import pallas as pl
from jax.experimental.pallas import tpu as pltpu  # noqa: F401  (kept for clarity)

# ---- model / problem sizes (small, consistent with the module) -------------
B = 2            # batch size
N = 8            # max_n_nodes
NF = 16          # node features
EF = 4           # edge features (one-hot bond types)
H = 32           # edge_embedding_size
G = 32           # graph embedding size (readout output)
MESSAGE_PASSES = 3

assert H == G, "packed readout layout assumes H == G"

NH = N * H                       # 256 lanes: the flat (neighbor, feature) axis

# ---- packed constant buffer layout ------------------------------------------
# W512 (192, 512)  row-stacked:
R_WPRE = 0                       # (NF, 512)     [tile(wp1) | tile(wp2)]
R_WEDGE = R_WPRE + NF            # (N*EF, 512)   [I_N (x) wp3 | I_N (x) ones(EF,H)]
R_WKRON = R_WEDGE + N * EF       # (N*NF, 512)   [I_N (x) wp2 | I_N (x) wp1]
R_MISC = R_WKRON + N * NF        # (B*N, 512)    Rep / (L - I) / bias rows
W512_ROWS = R_MISC + B * N       # = 192
# MISC columns: [0:B]=Rep,  [128:128+B*N]=(L - I),  [256:512]=bias rows 0..2
#
# W256 (256, 864)  column-stacked: [I_N(x)We | (1-I_N)(x)Wm | I_N(x)Wm | readout(96)]


# ---------------------------------------------------------------------------
# Pallas kernel: full EdgeMPNN forward for the whole batch (no grid)
# ---------------------------------------------------------------------------
def edge_mpnn_kernel(nodes2_ref, nodesb_ref, edges2_ref, w512_ref, w256_ref,
                     gsets_ref, gemb_ref):
    f32 = jnp.float32
    dot = lambda a, b: jnp.dot(a, b, preferred_element_type=f32)

    # --- constant slices (static, from the two pre-packed buffers) ----------
    wpre = w512_ref[R_WPRE:R_WPRE + NF, :]                      # (NF, 2*NH)
    wedge = w512_ref[R_WEDGE:R_WEDGE + N * EF, :]               # (N*EF, 2*NH)
    wkron = w512_ref[R_WKRON:R_WKRON + N * NF, :]               # (N*NF, 2*NH)
    rep = w512_ref[R_MISC:R_MISC + B * N, 0:B]                  # (B*N, B)   I_B (x) 1_N
    lmi = w512_ref[R_MISC:R_MISC + B * N, 128:128 + B * N]      # (B*N, B*N) L - I
    bpre_t = w512_ref[R_MISC:R_MISC + 1, 256:256 + NH]          # (1, NH)
    bprop_t = w512_ref[R_MISC + 1:R_MISC + 2, 256:256 + NH]     # (1, NH)
    bro = w512_ref[R_MISC + 2:R_MISC + 3, 256:256 + 3 * H]      # (1, 3H) [0 | bg | bemb]

    kwe = w256_ref[:, 0:NH]                                     # I_N (x) We
    m1 = w256_ref[:, NH:2 * NH]                                 # (1 - I_N) (x) Wm
    kwm = w256_ref[:, 2 * NH:3 * NH]                            # I_N (x) Wm
    rm = w256_ref[:, 3 * NH:3 * NH + 3 * H]                     # readout (256, 96)

    nodes2 = nodes2_ref[...]                                    # (B*N, NF)
    nodesb = nodesb_ref[...]                                    # (B, N*NF)
    edges2 = edges2_ref[...]                                    # (B*N, N*EF)

    # --- preprocess_edges, fully lane-dense (rows = (b,i), lanes = (j,h)) ----
    # t1: row-node term (broadcast over neighbor blocks); t2: neighbor-node term;
    # t3: edge-feature term + adjacency (broadcast over h).  All via the idle MXU.
    t1 = dot(nodes2, wpre)                                      # (16, 512)
    t2 = dot(rep, dot(nodesb, wkron))                           # (16, 512)
    t3 = dot(edges2, wedge)                                     # (16, 512)

    a_e = t3[:, 0:NH]                                           # edges @ wp3 (symmetric)
    exists = (t3[:, NH:2 * NH] != 0.0).astype(f32)              # (16, NH), symmetric

    # natural convention: pre_n[(b,i),(j,h)] = wp1@n_i + wp2@n_j + wp3@e_ij + bpre
    # transposed convention (roles of wp1/wp2 swapped => no data transpose needed)
    pre_n = t1[:, 0:NH] + t2[:, 0:NH] + a_e + bpre_t
    pre_t = t1[:, NH:2 * NH] + t2[:, NH:2 * NH] + a_e + bpre_t
    eemb_n = jnp.tanh(pre_n) * exists                           # e_emb[b,i,j]
    eemb_t = jnp.tanh(pre_t) * exists                           # e_emb[b,j,i]

    prop_n = dot(eemb_n, kwe) + bprop_t                         # e_emb @ We + b (natural)
    prop_t = dot(eemb_t, kwe) + bprop_t                         # same, transposed layout

    node_mask = (jnp.sum(exists, axis=-1, keepdims=True) > 0.0).astype(f32)   # (16, 1)

    # --- message passing: one MXU matmul per pass, alternating conventions ---
    # natural  -> transposed : msg^T = mem @ [(1 - I_N) (x) Wm]
    # transposed -> natural  : msg   = (L - I) @ mem^T @ [I_N (x) Wm]
    # The start convention is chosen so the final mem is always in NATURAL layout.
    if MESSAGE_PASSES == 0:
        mem = jnp.zeros((B * N, NH), f32)
    else:
        natural = (MESSAGE_PASSES % 2 == 1)
        mem = jnp.tanh(prop_n if natural else prop_t) * exists   # first pass: msg == 0
        for _ in range(MESSAGE_PASSES - 1):
            if natural:
                mem = jnp.tanh(prop_t + dot(mem, m1)) * exists
            else:
                mem = jnp.tanh(prop_n + dot(dot(lmi, mem), kwm)) * exists
            natural = not natural
        # loop always ends with `mem` in natural convention.

    # --- fused readout: [graph_sets | gate_pre | emb_pre] in one matmul ------
    combo = dot(mem, rm) + bro                                   # (16, 96)
    gs = combo[:, 0:H]                                           # sum_j mem[b,i,j]
    gate = jax.nn.sigmoid(combo[:, H:2 * H])                     # sigmoid(gs@(wg1+wg2)+bg)
    emb = combo[:, 2 * H:3 * H]                                  # gs @ wemb + bemb
    gated = gate * emb * node_mask                               # (16, G)
    gemb = jnp.sum(gated.reshape(B, N, G), axis=1)               # (B, G)

    gsets_ref[...] = gs
    gemb_ref[...] = gemb


# ---------------------------------------------------------------------------
# Constant packing: done ONCE at parameter-creation time (host-side numpy).
# ---------------------------------------------------------------------------
def pack_constants(params):
    (wp1, wp2, wp3, bpre, we, wm, bprop, wg1, wg2, bg, wemb, bemb) = \
        [np.asarray(p, np.float32) for p in params]
    I_N = np.eye(N, dtype=np.float32)
    ones_NN = np.ones((N, N), np.float32)
    col1 = np.ones((N, 1), np.float32)

    wpre = np.concatenate([np.tile(wp1, (1, N)), np.tile(wp2, (1, N))], axis=1)
    wedge = np.concatenate([np.kron(I_N, wp3),
                            np.kron(I_N, np.ones((EF, H), np.float32))], axis=1)
    wkron = np.concatenate([np.kron(I_N, wp2), np.kron(I_N, wp1)], axis=1)

    misc = np.zeros((B * N, 2 * NH), np.float32)
    misc[:, 0:B] = np.kron(np.eye(B, dtype=np.float32), col1)                  # Rep
    misc[:, 128:128 + B * N] = (np.kron(np.eye(B, dtype=np.float32), ones_NN)
                                - np.eye(B * N, dtype=np.float32))             # L - I
    misc[0, 256:256 + NH] = np.tile(bpre, (1, N)).ravel()
    misc[1, 256:256 + NH] = np.tile(bprop, (1, N)).ravel()
    misc[2, 256:256 + 3 * H] = np.concatenate(
        [np.zeros((1, H), np.float32), bg, bemb], axis=1).ravel()

    w512 = np.concatenate([wpre, wedge, wkron, misc], axis=0)                  # (192, 512)

    kwe = np.kron(I_N, we)
    m1 = np.kron(ones_NN - I_N, wm)
    kwm = np.kron(I_N, wm)
    rm = np.concatenate([np.kron(col1, np.eye(H, dtype=np.float32)),
                         np.kron(col1, wg1 + wg2),          # gate uses wg1 + wg2 (exact)
                         np.kron(col1, wemb)], axis=1)                          # (256, 96)
    w256 = np.concatenate([kwe, m1, kwm, rm], axis=1)                           # (256, 864)
    return jnp.asarray(w512), jnp.asarray(w256)


# ---------------------------------------------------------------------------
# Wrapper: single pallas_call, no per-call weight packing.
# ---------------------------------------------------------------------------
@jax.jit
def edge_mpnn_forward(nodes, edges, w512, w256):
    nodes2 = nodes.reshape(B * N, NF)        # row-major reshapes only (free in XLA)
    nodesb = nodes.reshape(B, N * NF)
    edges2 = edges.reshape(B * N, N * EF)
    gsets_flat, gemb = pl.pallas_call(
        edge_mpnn_kernel,
        out_shape=(
            jax.ShapeDtypeStruct((B * N, H), jnp.float32),
            jax.ShapeDtypeStruct((B, G), jnp.float32),
        ),
    )(nodes2, nodesb, edges2, w512, w256)
    return gemb, gsets_flat.reshape(B, N, H)


# ---------------------------------------------------------------------------
# Pure-JAX reference (dense masked math, un-fused weights) for correctness
# ---------------------------------------------------------------------------
def edge_mpnn_reference(nodes, edges, params):
    (wp1, wp2, wp3, bpre, we, wm, bprop, wg1, wg2, bg, wemb, bemb) = params
    adjacency = jnp.sum(edges, axis=-1)
    exists = (adjacency != 0).astype(jnp.float32)
    a_i = nodes @ wp1
    a_j = nodes @ wp2
    a_e = jnp.einsum("bijf,fh->bijh", edges, wp3)
    e_emb = jnp.tanh(a_i[:, :, None, :] + a_j[:, None, :, :] + a_e + bpre) * exists[..., None]
    e_term = jnp.einsum("bijh,hk->bijk", e_emb, we)
    mem = jnp.zeros((B, N, N, H), jnp.float32)
    for _ in range(MESSAGE_PASSES):
        mw = jnp.einsum("bjkh,hm->bjkm", mem, wm)
        s = jnp.sum(mw, axis=2)
        mw_t = jnp.transpose(mw, (0, 2, 1, 3))
        msg = s[:, None, :, :] - mw_t
        mem = jnp.tanh(e_term + msg + bprop) * exists[..., None]
    graph_sets = jnp.sum(mem, axis=2)
    node_mask = (jnp.sum(exists, axis=-1) != 0).astype(jnp.float32)
    gate = jax.nn.sigmoid(graph_sets @ wg1 + graph_sets @ wg2 + bg)
    emb = graph_sets @ wemb + bemb
    graph_emb = jnp.sum(gate * emb * node_mask[..., None], axis=1)
    return graph_emb, graph_sets


def make_params(key):
    ks = jax.random.split(key, 12)
    scale = 0.2
    wp1 = scale * jax.random.normal(ks[0], (NF, H), jnp.float32)
    wp2 = scale * jax.random.normal(ks[1], (NF, H), jnp.float32)
    wp3 = scale * jax.random.normal(ks[2], (EF, H), jnp.float32)
    bpre = scale * jax.random.normal(ks[3], (1, H), jnp.float32)
    we = scale * jax.random.normal(ks[4], (H, H), jnp.float32)
    wm = scale * jax.random.normal(ks[5], (H, H), jnp.float32)
    bprop = scale * jax.random.normal(ks[6], (1, H), jnp.float32)
    wg1 = scale * jax.random.normal(ks[7], (H, G), jnp.float32)
    wg2 = scale * jax.random.normal(ks[8], (H, G), jnp.float32)
    bg = scale * jax.random.normal(ks[9], (1, G), jnp.float32)
    wemb = scale * jax.random.normal(ks[10], (H, G), jnp.float32)
    bemb = scale * jax.random.normal(ks[11], (1, G), jnp.float32)
    return (wp1, wp2, wp3, bpre, we, wm, bprop, wg1, wg2, bg, wemb, bemb)


if __name__ == "__main__":
    key = jax.random.PRNGKey(0)
    k_nodes, k_pres, k_bond, k_w = jax.random.split(key, 4)

    nodes = jax.random.normal(k_nodes, (B, N, NF), jnp.float32)

    # symmetric one-hot-bond edge tensor with zero diagonal (molecular-graph convention,
    # as the torch module assumes; the kernel's no-transpose trick relies on symmetry)
    present_u = jnp.triu(jax.random.bernoulli(k_pres, 0.5, (B, N, N)), k=1)
    present = (present_u | jnp.transpose(present_u, (0, 2, 1))).astype(jnp.float32)
    bond_u = jnp.triu(jax.random.randint(k_bond, (B, N, N), 0, EF), k=1)
    bond = bond_u + jnp.transpose(bond_u, (0, 2, 1))
    edges = jax.nn.one_hot(bond, EF, dtype=jnp.float32) * present[..., None]

    params = make_params(k_w)
    w512, w256 = pack_constants(params)          # packed ONCE, outside the per-call path

    gemb, gsets = edge_mpnn_forward(nodes, edges, w512, w256)
    jax.block_until_ready((gemb, gsets))

    gemb_ref, gsets_ref = edge_mpnn_reference(nodes, edges, params)
    assert jnp.allclose(gemb, gemb_ref, atol=1e-4, rtol=1e-4)
    assert jnp.allclose(gsets, gsets_ref, atol=1e-4, rtol=1e-4)

    print("KERNEL_OK")
</pallas_src>

<mosaic_0001>
module attributes {stable_mosaic.version = 11 : i64} {
  func.func @edge_mpnn_kernel(%arg0: memref<16x16xf32, #tpu.memory_space<vmem>>, %arg1: memref<2x128xf32, #tpu.memory_space<vmem>>, %arg2: memref<16x32xf32, #tpu.memory_space<vmem>>, %arg3: memref<192x512xf32, #tpu.memory_space<vmem>>, %arg4: memref<256x864xf32, #tpu.memory_space<vmem>>, %arg5: memref<16x32xf32, #tpu.memory_space<vmem>>, %arg6: memref<2x32xf32, #tpu.memory_space<vmem>>) attributes {dimension_semantics = [], scalar_prefetch = 0 : i64, scratch_operands = 0 : i64, tpu.core_type = #tpu.core_type<tc>} {
    %c0 = arith.constant 0 : index
    %c0_0 = arith.constant 0 : index
    %0 = vector.load %arg3[%c0, %c0_0] : memref<192x512xf32, #tpu.memory_space<vmem>>, vector<16x512xf32>
    %c16 = arith.constant 16 : index
    %c0_1 = arith.constant 0 : index
    %1 = vector.load %arg3[%c16, %c0_1] : memref<192x512xf32, #tpu.memory_space<vmem>>, vector<32x512xf32>
    %c48 = arith.constant 48 : index
    %c0_2 = arith.constant 0 : index
    %2 = vector.load %arg3[%c48, %c0_2] : memref<192x512xf32, #tpu.memory_space<vmem>>, vector<128x512xf32>
    %c176 = arith.constant 176 : index
    %c0_3 = arith.constant 0 : index
    %3 = vector.load %arg3[%c176, %c0_3] : memref<192x512xf32, #tpu.memory_space<vmem>>, vector<16x2xf32>
    %c176_4 = arith.constant 176 : index
    %c128 = arith.constant 128 : index
    %4 = vector.load %arg3[%c176_4, %c128] : memref<192x512xf32, #tpu.memory_space<vmem>>, vector<16x16xf32>
    %c176_5 = arith.constant 176 : index
    %c256 = arith.constant 256 : index
    %5 = vector.load %arg3[%c176_5, %c256] : memref<192x512xf32, #tpu.memory_space<vmem>>, vector<1x256xf32>
    %c177 = arith.constant 177 : index
    %c256_6 = arith.constant 256 : index
    %6 = vector.load %arg3[%c177, %c256_6] : memref<192x512xf32, #tpu.memory_space<vmem>>, vector<1x256xf32>
    %c178 = arith.constant 178 : index
    %c256_7 = arith.constant 256 : index
    %7 = vector.load %arg3[%c178, %c256_7] : memref<192x512xf32, #tpu.memory_space<vmem>>, vector<1x96xf32>
    %c0_8 = arith.constant 0 : index
    %c0_9 = arith.constant 0 : index
    %8 = vector.load %arg4[%c0_8, %c0_9] : memref<256x864xf32, #tpu.memory_space<vmem>>, vector<256x256xf32>
    %c0_10 = arith.constant 0 : index
    %c256_11 = arith.constant 256 : index
    %9 = vector.load %arg4[%c0_10, %c256_11] : memref<256x864xf32, #tpu.memory_space<vmem>>, vector<256x256xf32>
    %c0_12 = arith.constant 0 : index
    %c512 = arith.constant 512 : index
    %10 = vector.load %arg4[%c0_12, %c512] : memref<256x864xf32, #tpu.memory_space<vmem>>, vector<256x256xf32>
    %c0_13 = arith.constant 0 : index
    %c768 = arith.constant 768 : index
    %11 = vector.load %arg4[%c0_13, %c768] : memref<256x864xf32, #tpu.memory_space<vmem>>, vector<256x96xf32>
    %c0_14 = arith.constant 0 : index
    %c0_15 = arith.constant 0 : index
    %12 = vector.load %arg0[%c0_14, %c0_15] : memref<16x16xf32, #tpu.memory_space<vmem>>, vector<16x16xf32>
    %c0_16 = arith.constant 0 : index
    %c0_17 = arith.constant 0 : index
    %13 = vector.load %arg1[%c0_16, %c0_17] : memref<2x128xf32, #tpu.memory_space<vmem>>, vector<2x128xf32>
    %c0_18 = arith.constant 0 : index
    %c0_19 = arith.constant 0 : index
    %14 = vector.load %arg2[%c0_18, %c0_19] : memref<16x32xf32, #tpu.memory_space<vmem>>, vector<16x32xf32>
    %cst = arith.constant dense<0.000000e+00> : vector<16x512xf32>
    %15 = tpu.matmul %12, %0, %cst {dimension_numbers = #tpu.dot_dimension_numbers<[1], [0], [0], [1], [0, 0, 1, 1], [], []>} : vector<16x16xf32>, vector<16x512xf32>, vector<16x512xf32> -> vector<16x512xf32>
    %cst_20 = arith.constant dense<0.000000e+00> : vector<2x512xf32>
    %16 = tpu.matmul %13, %2, %cst_20 {dimension_numbers = #tpu.dot_dimension_numbers<[1], [0], [0], [1], [0, 0, 1, 1], [], []>} : vector<2x128xf32>, vector<128x512xf32>, vector<2x512xf32> -> vector<2x512xf32>
    %cst_21 = arith.constant dense<0.000000e+00> : vector<16x512xf32>
    %17 = tpu.matmul %3, %16, %cst_21 {dimension_numbers = #tpu.dot_dimension_numbers<[1], [0], [0], [1], [0, 0, 1, 1], [], []>} : vector<16x2xf32>, vector<2x512xf32>, vector<16x512xf32> -> vector<16x512xf32>
    %cst_22 = arith.constant dense<0.000000e+00> : vector<16x512xf32>
    %18 = tpu.matmul %14, %1, %cst_22 {dimension_numbers = #tpu.dot_dimension_numbers<[1], [0], [0], [1], [0, 0, 1, 1], [], []>} : vector<16x32xf32>, vector<32x512xf32>, vector<16x512xf32> -> vector<16x512xf32>
    %19 = vector.extract_strided_slice %18 {offsets = [0, 0], sizes = [16, 256], strides = [1, 1]} : vector<16x512xf32> to vector<16x256xf32>
    %20 = vector.extract_strided_slice %18 {offsets = [0, 256], sizes = [16, 256], strides = [1, 1]} : vector<16x512xf32> to vector<16x256xf32>
    %cst_23 = arith.constant 0.000000e+00 : f32
    %21 = vector.broadcast %cst_23 : f32 to vector<16x256xf32>
    %22 = arith.cmpf one, %20, %21 : vector<16x256xf32>
    %23 = arith.extui %22 : vector<16x256xi1> to vector<16x256xi32>
    %24 = arith.sitofp %23 : vector<16x256xi32> to vector<16x256xf32>
    %25 = vector.extract_strided_slice %15 {offsets = [0, 0], sizes = [16, 256], strides = [1, 1]} : vector<16x512xf32> to vector<16x256xf32>
    %26 = vector.extract_strided_slice %17 {offsets = [0, 0], sizes = [16, 256], strides = [1, 1]} : vector<16x512xf32> to vector<16x256xf32>
    %27 = arith.addf %25, %26 : vector<16x256xf32>
    %28 = arith.addf %27, %19 : vector<16x256xf32>
    %29 = vector.broadcast %5 : vector<1x256xf32> to vector<16x256xf32>
    %30 = arith.addf %28, %29 : vector<16x256xf32>
    %31 = vector.extract_strided_slice %15 {offsets = [0, 256], sizes = [16, 256], strides = [1, 1]} : vector<16x512xf32> to vector<16x256xf32>
    %32 = vector.extract_strided_slice %17 {offsets = [0, 256], sizes = [16, 256], strides = [1, 1]} : vector<16x512xf32> to vector<16x256xf32>
    %33 = arith.addf %31, %32 : vector<16x256xf32>
    %34 = arith.addf %33, %19 : vector<16x256xf32>
    %35 = vector.broadcast %5 : vector<1x256xf32> to vector<16x256xf32>
    %36 = arith.addf %34, %35 : vector<16x256xf32>
    %37 = math.tanh %30 : vector<16x256xf32>
    %38 = arith.mulf %37, %24 : vector<16x256xf32>
    %39 = math.tanh %36 : vector<16x256xf32>
    %40 = arith.mulf %39, %24 : vector<16x256xf32>
    %cst_24 = arith.constant dense<0.000000e+00> : vector<16x256xf32>
    %41 = tpu.matmul %38, %8, %cst_24 {dimension_numbers = #tpu.dot_dimension_numbers<[1], [0], [0], [1], [0, 0, 1, 1], [], []>} : vector<16x256xf32>, vector<256x256xf32>, vector<16x256xf32> -> vector<16x256xf32>
    %42 = vector.broadcast %6 : vector<1x256xf32> to vector<16x256xf32>
    %43 = arith.addf %41, %42 : vector<16x256xf32>
    %cst_25 = arith.constant dense<0.000000e+00> : vector<16x256xf32>
    %44 = tpu.matmul %40, %8, %cst_25 {dimension_numbers = #tpu.dot_dimension_numbers<[1], [0], [0], [1], [0, 0, 1, 1], [], []>} : vector<16x256xf32>, vector<256x256xf32>, vector<16x256xf32> -> vector<16x256xf32>
    %45 = vector.broadcast %6 : vector<1x256xf32> to vector<16x256xf32>
    %46 = arith.addf %44, %45 : vector<16x256xf32>
    %cst_26 = arith.constant dense<0.000000e+00> : vector<16xf32>
    %47 = vector.multi_reduction <add>, %24, %cst_26 [1] : vector<16x256xf32> to vector<16xf32>
    %48 = vector.shape_cast %47 : vector<16xf32> to vector<16x1xf32>
    %cst_27 = arith.constant 0.000000e+00 : f32
    %49 = vector.broadcast %cst_27 : f32 to vector<16x1xf32>
    %50 = arith.cmpf ogt, %48, %49 : vector<16x1xf32>
    %51 = arith.extui %50 : vector<16x1xi1> to vector<16x1xi32>
    %52 = arith.sitofp %51 : vector<16x1xi32> to vector<16x1xf32>
    %53 = math.tanh %43 : vector<16x256xf32>
    %54 = arith.mulf %53, %24 : vector<16x256xf32>
    %cst_28 = arith.constant dense<0.000000e+00> : vector<16x256xf32>
    %55 = tpu.matmul %54, %9, %cst_28 {dimension_numbers = #tpu.dot_dimension_numbers<[1], [0], [0], [1], [0, 0, 1, 1], [], []>} : vector<16x256xf32>, vector<256x256xf32>, vector<16x256xf32> -> vector<16x256xf32>
    %56 = arith.addf %46, %55 : vector<16x256xf32>
    %57 = math.tanh %56 : vector<16x256xf32>
    %58 = arith.mulf %57, %24 : vector<16x256xf32>
    %cst_29 = arith.constant dense<0.000000e+00> : vector<16x256xf32>
    %59 = tpu.matmul %4, %58, %cst_29 {dimension_numbers = #tpu.dot_dimension_numbers<[1], [0], [0], [1], [0, 0, 1, 1], [], []>} : vector<16x16xf32>, vector<16x256xf32>, vector<16x256xf32> -> vector<16x256xf32>
    %cst_30 = arith.constant dense<0.000000e+00> : vector<16x256xf32>
    %60 = tpu.matmul %59, %10, %cst_30 {dimension_numbers = #tpu.dot_dimension_numbers<[1], [0], [0], [1], [0, 0, 1, 1], [], []>} : vector<16x256xf32>, vector<256x256xf32>, vector<16x256xf32> -> vector<16x256xf32>
    %61 = arith.addf %43, %60 : vector<16x256xf32>
    %62 = math.tanh %61 : vector<16x256xf32>
    %63 = arith.mulf %62, %24 : vector<16x256xf32>
    %cst_31 = arith.constant dense<0.000000e+00> : vector<16x96xf32>
    %64 = tpu.matmul %63, %11, %cst_31 {dimension_numbers = #tpu.dot_dimension_numbers<[1], [0], [0], [1], [0, 0, 1, 1], [], []>} : vector<16x256xf32>, vector<256x96xf32>, vector<16x96xf32> -> vector<16x96xf32>
    %65 = vector.broadcast %7 : vector<1x96xf32> to vector<16x96xf32>
    %66 = arith.addf %64, %65 : vector<16x96xf32>
    %67 = vector.extract_strided_slice %66 {offsets = [0, 0], sizes = [16, 32], strides = [1, 1]} : vector<16x96xf32> to vector<16x32xf32>
    %68 = vector.extract_strided_slice %66 {offsets = [0, 32], sizes = [16, 32], strides = [1, 1]} : vector<16x96xf32> to vector<16x32xf32>
    %69 = arith.negf %68 : vector<16x32xf32>
    %70 = math.exp %69 : vector<16x32xf32>
    %cst_32 = arith.constant 1.000000e+00 : f32
    %71 = vector.broadcast %cst_32 : f32 to vector<16x32xf32>
    %72 = arith.addf %71, %70 : vector<16x32xf32>
    %73 = arith.divf %71, %72 : vector<16x32xf32>
    %74 = vector.extract_strided_slice %66 {offsets = [0, 64], sizes = [16, 32], strides = [1, 1]} : vector<16x96xf32> to vector<16x32xf32>
    %75 = arith.mulf %73, %74 : vector<16x32xf32>
    %76 = vector.broadcast %52 : vector<16x1xf32> to vector<16x32xf32>
    %77 = arith.mulf %75, %76 : vector<16x32xf32>
    %78 = vector.shape_cast %77 : vector<16x32xf32> to vector<2x8x32xf32>
    %cst_33 = arith.constant dense<0.000000e+00> : vector<2x32xf32>
    %79 = vector.multi_reduction <add>, %78, %cst_33 [1] : vector<2x8x32xf32> to vector<2x32xf32>
    %c0_34 = arith.constant 0 : index
    %c0_35 = arith.constant 0 : index
    %80 = vector.load %arg5[%c0_34, %c0_35] : memref<16x32xf32, #tpu.memory_space<vmem>>, vector<16x32xf32>
    tpu.vector_store %arg5[%c0_34, %c0_35], %67 {strides = array<i32>} : memref<16x32xf32, #tpu.memory_space<vmem>>, vector<16x32xf32>,
    %c0_36 = arith.constant 0 : index
    %c0_37 = arith.constant 0 : index
    %81 = vector.load %arg6[%c0_36, %c0_37] : memref<2x32xf32, #tpu.memory_space<vmem>>, vector<2x32xf32>
    tpu.vector_store %arg6[%c0_36, %c0_37], %79 {strides = array<i32>} : memref<2x32xf32, #tpu.memory_space<vmem>>, vector<2x32xf32>,
    return
  }
}

</mosaic_0001>

<bundles_post_ra>
// kernel: edge_mpnn_forward.1
= control target key start
LH: loop header
LB: loop body
LE: loop exit
PB: predicated region body
PF: predicated region fallthrough
CT: control target
= control target key end

     0   :  { %12 = vsyncpa [#allocation3], 0  ;;  %v2216_v7 = vmov 0.0   ;;  %vm350_vm0 = vcmask 130048   ;;  %s3358_s0 = inlined_call_operand.vmem [shape: f32[16,16], index: 0, kind: input, shape index: {}]   ;;  %s3359_s1 = inlined_call_operand.vmem [shape: f32[2,128], index: 1, kind: input, shape index: {}]   ;;  %s3360_s2 = inlined_call_operand.vmem [shape: f32[16,32], index: 2, kind: input, shape index: {}]   ;;  %s3361_s3 = inlined_call_operand.vmem [shape: f32[192,512], index: 3, kind: input, shape index: {}]   ;;  %s3362_s4 = inlined_call_operand.vmem [shape: f32[256,864], index: 4, kind: input, shape index: {}]   ;;  %s3363_s5 = inlined_call_operand.hbm [shape: f32[16,32], index: 5, kind: output, shape index: {0}]   ;;  %s3364_s6 = inlined_call_operand.hbm [shape: f32[2,32], index: 6, kind: output, shape index: {1}]  }
   0x1   :  { %v25_v0 = vld [vmem:[%s3361_s3 + $0x8] sm:$0xff]  ;;  %v27_v2 = vld [vmem:[%s3361_s3 + $0x18] sm:$0xff]  ;;  %v24_v5 = vld [vmem:[%s3361_s3] sm:$0xff]  ;;  %421 = vmatprep.mubr.f32.mxu0 %v2216_v7  ;;  %498 = vmatprep.mubr.f32.mxu1 %v2216_v7 }
   0x2   :  { %v29_v1 = vld [vmem:[%s3361_s3 + $0x28] sm:$0xff]  ;;  %v31_v4 = vld [vmem:[%s3361_s3 + $0x38] sm:$0xff]  ;;  %v28_v6 = vld [vmem:[%s3361_s3 + $0x20] sm:$0xff] }
   0x3   :  { %v1718_v3 = vpack.c.bf16 %v29_v1, %v25_v0  ;;  %v1722_v8 = vpack.c.bf16 %v31_v4, %v27_v2  ;;  %v1720_v9 = vpack.c.bf16 %v28_v6, %v24_v5  ;;  %v26_v10 = vld [vmem:[%s3361_s3 + $0x10] sm:$0xff]  ;;  %v49_v12 = vld [vmem:[%s3361_s3 + $0xc8] sm:$0xff]  ;;  %v51_v15 = vld [vmem:[%s3361_s3 + $0xd8] sm:$0xff] }
   0x4   :  { %v30_v11 = vld [vmem:[%s3361_s3 + $0x30] sm:$0xff]  ;;  %v53_v14 = vld [vmem:[%s3361_s3 + $0xe8] sm:$0xff]  ;;  %v55_v16 = vld [vmem:[%s3361_s3 + $0xf8] sm:$0xff] }
   0x5   :  { %1719 = vmatprep.subr.bf16.mxu0 %v1718_v3  ;;  %v1724_v13 = vpack.c.bf16 %v30_v11, %v26_v10  ;;  %1723 = vmatprep.subr.bf16.mxu1 %v1722_v8  ;;  %v1726_v17 = vpack.c.bf16 %v53_v14, %v49_v12  ;;  %v1758_v18 = vpack.c.bf16 %v55_v16, %v51_v15  ;;  %v345_v19 = vld [vmem:[%s3358_s0] sm:$0xff]  ;;  %v50_v23 = vld [vmem:[%s3361_s3 + $0xd0] sm:$0xff]  ;;  %v57_v25 = vld [vmem:[%s3361_s3 + $0x108] sm:$0xff] }
   0x6   :  { %1721 = vmatpush1.bf16.msra.mxu0 %v1720_v9  ;;  %v48_v20 = vld [vmem:[%s3361_s3 + $0xc0] sm:$0xff]  ;;  %v54_v24 = vld [vmem:[%s3361_s3 + $0xf0] sm:$0xff]  ;;  %v61_v27 = vld [vmem:[%s3361_s3 + $0x128] sm:$0xff] }
   0x7   :  { %v52_v21 = vld [vmem:[%s3361_s3 + $0xe0] sm:$0xff]  ;;  %1725 = vmatpush1.bf16.msra.mxu1 %v1724_v13  ;;  %1727 = vmatprep.subr.bf16.mxu0 %v1726_v17  ;;  %v1760_v26 = vpack.c.bf16 %v54_v24, %v50_v23  ;;  %v59_v28 = vld [vmem:[%s3361_s3 + $0x118] sm:$0xff]  ;;  %v1730_v30 = vpack.c.bf16 %v61_v27, %v57_v25  ;;  %v58_v34 = vld [vmem:[%s3361_s3 + $0x110] sm:$0xff] }
   0x8   :  { %v1728_v22 = vpack.c.bf16 %v52_v21, %v48_v20  ;;  %1759 = vmatprep.subr.bf16.mxu1 %v1758_v18  ;;  %v63_v29 = vld [vmem:[%s3361_s3 + $0x138] sm:$0xff]  ;;  %v56_v32 = vld [vmem:[%s3361_s3 + $0x100] sm:$0xff]  ;;  %v62_v36 = vld [vmem:[%s3361_s3 + $0x130] sm:$0xff] }
   0x9   :  { %1654 = vmatmul.mubr.msk.f32.vlgmr.msra.gmra.mrb[0].mxu0 %vm350_vm0, %v345_v19  ;;  %v1762_v31 = vpack.c.bf16 %v63_v29, %v59_v28  ;;  %v60_v33 = vld [vmem:[%s3361_s3 + $0x120] sm:$0xff]  ;;  %v65_v37 = vld [vmem:[%s3361_s3 + $0x148] sm:$0xff]  ;;  %v1764_v39 = vpack.c.bf16 %v62_v36, %v58_v34  ;;  %v67_v41 = vld [vmem:[%s3361_s3 + $0x158] sm:$0xff] }
   0xa   :  { %1656 = vmatmul.mubr.msk.f32.vlgmr.msra.gmra.mrb[0].mxu1 %vm350_vm0, %v345_v19  ;;  %1729 = vmatpush1.bf16.msra.mxu0 %v1728_v22  ;;  %v1732_v35 = vpack.c.bf16 %v60_v33, %v56_v32  ;;  %v69_v38 = vld [vmem:[%s3361_s3 + $0x168] sm:$0xff]  ;;  %v71_v42 = vld [vmem:[%s3361_s3 + $0x178] sm:$0xff]  ;;  %v64_v43 = vld [vmem:[%s3361_s3 + $0x140] sm:$0xff] }
   0xb   :  { %1761 = vmatpush1.bf16.msra.mxu1 %v1760_v26  ;;  %1731 = vmatprep.subr.bf16.mxu0 %v1730_v30  ;;  %v1734_v40 = vpack.c.bf16 %v69_v38, %v65_v37  ;;  %v1766_v44 = vpack.c.bf16 %v71_v42, %v67_v41  ;;  %v68_v45 = vld [vmem:[%s3361_s3 + $0x160] sm:$0xff]  ;;  %v66_v46 = vld [vmem:[%s3361_s3 + $0x150] sm:$0xff]  ;;  %v73_v48 = vld [vmem:[%s3361_s3 + $0x188] sm:$0xff] }
   0xc   :  { %1763 = vmatprep.subr.bf16.mxu1 %v1762_v31  ;;  %v70_v47 = vld [vmem:[%s3361_s3 + $0x170] sm:$0xff]  ;;  %427 = vmatprep.mubr.f32.mxu0 %v2216_v7  ;;  %v77_v49 = vld [vmem:[%s3361_s3 + $0x1a8] sm:$0xff]  ;;  %v75_v50 = vld [vmem:[%s3361_s3 + $0x198] sm:$0xff]  ;;  %v1736_v51 = vpack.c.bf16 %v68_v45, %v64_v43 }
   0xd   :  { %504 = vmatprep.mubr.f32.mxu1 %v2216_v7  ;;  %v79_v52 = vld [vmem:[%s3361_s3 + $0x1b8] sm:$0xff]  ;;  %v1768_v53 = vpack.c.bf16 %v70_v47, %v66_v46  ;;  %v1738_v54 = vpack.c.bf16 %v77_v49, %v73_v48  ;;  %v72_v55 = vld [vmem:[%s3361_s3 + $0x180] sm:$0xff]  ;;  %v74_v57 = vld [vmem:[%s3361_s3 + $0x190] sm:$0xff] }
   0xe   :  { %1733 = vmatpush1.bf16.msra.mxu0 %v1732_v35  ;;  %v76_v56 = vld [vmem:[%s3361_s3 + $0x1a0] sm:$0xff]  ;;  %v1770_v58 = vpack.c.bf16 %v79_v52, %v75_v50  ;;  %v78_v59 = vld [vmem:[%s3361_s3 + $0x1b0] sm:$0xff]  ;;  %v81_v60 = vld [vmem:[%s3361_s3 + $0x1c8] sm:$0xff] }
   0xf   :  { %1765 = vmatpush1.bf16.msra.mxu1 %v1764_v39  ;;  %1735 = vmatprep.subr.bf16.mxu0 %v1734_v40  ;;  %v85_v61 = vld [vmem:[%s3361_s3 + $0x1e8] sm:$0xff]  ;;  %v83_v62 = vld [vmem:[%s3361_s3 + $0x1d8] sm:$0xff]  ;;  %v1740_v0 = vpack.c.bf16 %v76_v56, %v72_v55  ;;  %v1772_v1 = vpack.c.bf16 %v78_v59, %v74_v57  ;;  %v80_v3 = vld [vmem:[%s3361_s3 + $0x1c0] sm:$0xff] }
  0x10   :  { %1767 = vmatprep.subr.bf16.mxu1 %v1766_v44  ;;  %v87_v63 = vld [vmem:[%s3361_s3 + $0x1f8] sm:$0xff]  ;;  %v1742_v2 = vpack.c.bf16 %v85_v61, %v81_v60  ;;  %v84_v4 = vld [vmem:[%s3361_s3 + $0x1e0] sm:$0xff]  ;;  %v82_v5 = vld [vmem:[%s3361_s3 + $0x1d0] sm:$0xff] }
  0x11   :  { %v1774_v6 = vpack.c.bf16 %v87_v63, %v83_v62  ;;  %v86_v8 = vld [vmem:[%s3361_s3 + $0x1f0] sm:$0xff]  ;;  %v89_v9 = vld [vmem:[%s3361_s3 + $0x208] sm:$0xff]  ;;  %v91_v11 = vld [vmem:[%s3361_s3 + $0x218] sm:$0xff]  ;;  %v1744_v13 = vpack.c.bf16 %v84_v4, %v80_v3 }
  0x12   :  { %1737 = vmatpush1.bf16.msra.mxu0 %v1736_v51  ;;  %v93_v10 = vld [vmem:[%s3361_s3 + $0x228] sm:$0xff]  ;;  %v95_v12 = vld [vmem:[%s3361_s3 + $0x238] sm:$0xff]  ;;  %v88_v14 = vld [vmem:[%s3361_s3 + $0x200] sm:$0xff]  ;;  %v1776_v15 = vpack.c.bf16 %v86_v8, %v82_v5 }
  0x13   :  { %1769 = vmatpush1.bf16.msra.mxu1 %v1768_v53  ;;  %1739 = vmatprep.subr.bf16.mxu0 %v1738_v54  ;;  %v1746_v16 = vpack.c.bf16 %v93_v10, %v89_v9  ;;  %v92_v17 = vld [vmem:[%s3361_s3 + $0x220] sm:$0xff]  ;;  %v90_v18 = vld [vmem:[%s3361_s3 + $0x210] sm:$0xff]  ;;  %v346_v19 = vld [vmem:[%s3358_s0 + $0x8] sm:$0xff]  ;;  %v1778_v20 = vpack.c.bf16 %v95_v12, %v91_v11 }
  0x14   :  { %1771 = vmatprep.subr.bf16.mxu1 %v1770_v58  ;;  %v94_v21 = vld [vmem:[%s3361_s3 + $0x230] sm:$0xff]  ;;  %v97_v22 = vld [vmem:[%s3361_s3 + $0x248] sm:$0xff]  ;;  %1655 = vmatmul.mubr.msk.f32.gmra.mrb[2].mxu0 %vm350_vm0, %v346_v19  ;;  %v99_v24 = vld [vmem:[%s3361_s3 + $0x258] sm:$0xff]  ;;  %v1748_v26 = vpack.c.bf16 %v92_v17, %v88_v14 }
  0x15   :  { %v101_v23 = vld [vmem:[%s3361_s3 + $0x268] sm:$0xff]  ;;  %v103_v25 = vld [vmem:[%s3361_s3 + $0x278] sm:$0xff]  ;;  %1657 = vmatmul.mubr.msk.f32.gmra.mrb[2].mxu1 %vm350_vm0, %v346_v19  ;;  %575 = vmatprep.mubr.f32.mxu0 %v2216_v7  ;;  %v96_v27 = vld [vmem:[%s3361_s3 + $0x240] sm:$0xff]  ;;  %v1780_v28 = vpack.c.bf16 %v94_v21, %v90_v18 }
  0x16   :  { %1741 = vmatpush1.bf16.msra.mxu0 %v1740_v0  ;;  %646 = vmatprep.mubr.f32.mxu1 %v2216_v7  ;;  %v1750_v29 = vpack.c.bf16 %v101_v23, %v97_v22  ;;  %v100_v30 = vld [vmem:[%s3361_s3 + $0x260] sm:$0xff]  ;;  %v98_v31 = vld [vmem:[%s3361_s3 + $0x250] sm:$0xff] }
  0x17   :  { %1773 = vmatpush1.bf16.msra.mxu1 %v1772_v1  ;;  %1743 = vmatprep.subr.bf16.mxu0 %v1742_v2 }
  0x18   :  { %1775 = vmatprep.subr.bf16.mxu1 %v1774_v6 }
  0x1a   :  { %1745 = vmatpush1.bf16.msra.mxu0 %v1744_v13 }
  0x1b   :  { %1777 = vmatpush1.bf16.msra.mxu1 %v1776_v15  ;;  %1747 = vmatprep.subr.bf16.mxu0 %v1746_v16 }
  0x1c   :  { %13 = vsyncpa [#allocation5], 0  ;;  %1779 = vmatprep.subr.bf16.mxu1 %v1778_v20  ;;  %v1782_v32 = vpack.c.bf16 %v103_v25, %v99_v24  ;;  %v102_v33 = vld [vmem:[%s3361_s3 + $0x270] sm:$0xff]  ;;  %v105_v34 = vld [vmem:[%s3361_s3 + $0x288] sm:$0xff]  ;;  %v1752_v38 = vpack.c.bf16 %v100_v30, %v96_v27  ;;  %vm660_vm1 = vcmask 1041408   ;;  %vm653_vm2 = vcmask 15360  }
  0x1d   :  { %v109_v35 = vld [vmem:[%s3361_s3 + $0x2a8] sm:$0xff]  ;;  %v107_v36 = vld [vmem:[%s3361_s3 + $0x298] sm:$0xff]  ;;  %v1784_v39 = vpack.c.bf16 %v102_v33, %v98_v31  ;;  %v104_v41 = vld [vmem:[%s3361_s3 + $0x280] sm:$0xff]  ;;  %vm827_vm3 = vcmask 261120   ;;  %s2217_s13 = smov 96   ;;  %vm1596_vm9 = vcmask 523520  }
  0x1e   :  { %v111_v37 = vld [vmem:[%s3361_s3 + $0x2b8] sm:$0xff]  ;;  %1749 = vmatpush1.bf16.msra.mxu0 %v1748_v26  ;;  %v1754_v40 = vpack.c.bf16 %v109_v35, %v105_v34  ;;  %v108_v42 = vld [vmem:[%s3361_s3 + $0x2a0] sm:$0xff]  ;;  %v106_v44 = vld [vmem:[%s3361_s3 + $0x290] sm:$0xff] }
  0x1f   :  { %1781 = vmatpush1.bf16.msra.mxu1 %v1780_v28  ;;  %1751 = vmatprep.subr.bf16.mxu0 %v1750_v29  ;;  %v1786_v43 = vpack.c.bf16 %v111_v37, %v107_v36  ;;  %v110_v45 = vld [vmem:[%s3361_s3 + $0x2b0] sm:$0xff]  ;;  %v1756_v46 = vpack.c.bf16 %v108_v42, %v104_v41  ;;  %v347_v48 = vld [vmem:[%s3359_s1] sm:$0x3]  ;;  %v33_v49 = vld [vmem:[%s3361_s3 + $0x48] sm:$0xff] }
  0x20   :  { %1783 = vmatprep.subr.bf16.mxu1 %v1782_v32  ;;  %v1788_v47 = vpack.c.bf16 %v110_v45, %v106_v44  ;;  %v37_v50 = vld [vmem:[%s3361_s3 + $0x68] sm:$0xff]  ;;  %v32_v51 = vld [vmem:[%s3361_s3 + $0x40] sm:$0xff]  ;;  %v35_v3 = vld [vmem:[%s3361_s3 + $0x58] sm:$0xff] }
  0x21   :  { %v36_v52 = vld [vmem:[%s3361_s3 + $0x60] sm:$0xff]  ;;  %v41_v54 = vld [vmem:[%s3361_s3 + $0x88] sm:$0xff]  ;;  %v1790_v59 = vpack.c.bf16 %v37_v50, %v33_v49  ;;  %v123_v5 = vld [vmem:[%s3362_s4 + $0x38] sm:$0xff] }
  0x22   :  { %1753 = vmatpush1.bf16.msra.mxu0 %v1752_v38  ;;  %v45_v55 = vld [vmem:[%s3361_s3 + $0xa8] sm:$0xff]  ;;  %v112_v58 = vld [vmem:[%s3361_s3 + $0x2c0] sm:$0xff]  ;;  %v1792_v63 = vpack.c.bf16 %v36_v52, %v32_v51  ;;  %v39_v6 = vld [vmem:[%s3361_s3 + $0x78] sm:$0xff] }
  0x23   :  { %1785 = vmatpush1.bf16.msra.mxu1 %v1784_v39  ;;  %1755 = vmatprep.subr.bf16.mxu0 %v1754_v40  ;;  %v122_v60 = vld [vmem:[%s3362_s4 + $0x8] sm:$0xff]  ;;  %v124_v61 = vld [vmem:[%s3362_s4 + $0x40] sm:$0xff]  ;;  %v1794_v2 = vpack.c.bf16 %v45_v55, %v41_v54  ;;  %v126_v9 = vld [vmem:[%s3362_s4 + $0x78] sm:$0xff]  ;;  %v1798_v14 = vpack.c.bf16 %v39_v6, %v35_v3 }
  0x24   :  { %1787 = vmatprep.subr.bf16.mxu1 %v1786_v43  ;;  %v40_v0 = vld [vmem:[%s3361_s3 + $0x80] sm:$0xff]  ;;  %v1806_v8 = vpack.c.bf16 %v124_v61, %v122_v60  ;;  %v128_v10 = vld [vmem:[%s3362_s4 + $0xb0] sm:$0xff]  ;;  %v43_v17 = vld [vmem:[%s3361_s3 + $0x98] sm:$0xff] }
  0x25   :  { %v44_v1 = vld [vmem:[%s3361_s3 + $0xa0] sm:$0xff]  ;;  %v34_v15 = vld [vmem:[%s3361_s3 + $0x50] sm:$0xff]  ;;  %v1810_v18 = vpack.c.bf16 %v128_v10, %v126_v9  ;;  %v47_v19 = vld [vmem:[%s3361_s3 + $0xb8] sm:$0xff] }
  0x26   :  { %1757 = vmatpush1.bf16.msra.mxu0 %v1756_v46  ;;  %v121_v4 = vld [vmem:[%s3362_s4] sm:$0xff]  ;;  %v1796_v12 = vpack.c.bf16 %v44_v1, %v40_v0  ;;  %v38_v16 = vld [vmem:[%s3361_s3 + $0x70] sm:$0xff]  ;;  %v127_v21 = vld [vmem:[%s3362_s4 + $0xa8] sm:$0xff]  ;;  %v1802_v26 = vpack.c.bf16 %v47_v19, %v43_v17 }
  0x27   :  { %1789 = vmatpush1.bf16.msra.mxu1 %v1788_v47  ;;  %v113_v11 = vld [vmem:[%s3361_s3 + $0x2e0] sm:$0xff]  ;;  %v1808_v13 = vpack.c.bf16 %v123_v5, %v121_v4  ;;  %v125_v20 = vld [vmem:[%s3362_s4 + $0x70] sm:$0xff]  ;;  %v130_v22 = vld [vmem:[%s3362_s4 + $0xe8] sm:$0xff]  ;;  %v1800_v25 = vpack.c.bf16 %v38_v16, %v34_v15 }
  0x28   :  { %v132_v23 = vld [vmem:[%s3362_s4 + $0x120] sm:$0xff]  ;;  %v42_v27 = vld [vmem:[%s3361_s3 + $0x90] sm:$0xff]  ;;  %v1812_v29 = vpack.c.bf16 %v127_v21, %v125_v20  ;;  %v131_v32 = vld [vmem:[%s3362_s4 + $0x118] sm:$0xff] }
  0x29   :  { %576 = vmatmul.mubr.f32.vlgmr.msra.gmra.mrb[4].mxu0 %v347_v48  ;;  %v348_v24 = vld [vmem:[%s3360_s2] sm:$0xff]  ;;  %v46_v28 = vld [vmem:[%s3361_s3 + $0xb0] sm:$0xff]  ;;  %v1814_v30 = vpack.c.bf16 %v132_v23, %v130_v22  ;;  %v134_v33 = vld [vmem:[%s3362_s4 + $0x158] sm:$0xff] }
  0x2a   :  { %647 = vmatmul.mubr.f32.vlgmr.msra.gmra.mrb[4].mxu1 %v347_v48  ;;  %737 = vmatprep.mubr.f32.mxu0 %v2216_v7  ;;  %v129_v31 = vld [vmem:[%s3362_s4 + $0xe0] sm:$0xff]  ;;  %v136_v34 = vld [vmem:[%s3362_s4 + $0x190] sm:$0xff]  ;;  %v349_v35 = vld [vmem:[%s3360_s2 + $0x8] sm:$0xff]  ;;  %v1804_v36 = vpack.c.bf16 %v46_v28, %v42_v27 }
  0x2b   :  { %814 = vmatprep.mubr.f32.mxu1 %v2216_v7  ;;  %v1816_v37 = vpack.c.bf16 %v131_v32, %v129_v31  ;;  %v1818_v38 = vpack.c.bf16 %v136_v34, %v134_v33  ;;  %v133_v39 = vld [vmem:[%s3362_s4 + $0x150] sm:$0xff]  ;;  %v135_v40 = vld [vmem:[%s3362_s4 + $0x188] sm:$0xff]  ;;  %v140_v42 = vld [vmem:[%s3362_s4 + $0x200] sm:$0xff] }
  0x2c   :  { %v138_v41 = vld [vmem:[%s3362_s4 + $0x1c8] sm:$0xff]  ;;  %v1820_v43 = vpack.c.bf16 %v135_v40, %v133_v39  ;;  %v137_v45 = vld [vmem:[%s3362_s4 + $0x1c0] sm:$0xff]  ;;  %v139_v46 = vld [vmem:[%s3362_s4 + $0x1f8] sm:$0xff] }
  0x2d   :  { %v1822_v44 = vpack.c.bf16 %v140_v42, %v138_v41  ;;  %v142_v47 = vld [vmem:[%s3362_s4 + $0x238] sm:$0xff]  ;;  %v144_v48 = vld [vmem:[%s3362_s4 + $0x270] sm:$0xff]  ;;  %v1824_v49 = vpack.c.bf16 %v139_v46, %v137_v45  ;;  %v143_v52 = vld [vmem:[%s3362_s4 + $0x268] sm:$0xff] }
  0x2e   :  { %v1826_v50 = vpack.c.bf16 %v144_v48, %v142_v47  ;;  %v141_v51 = vld [vmem:[%s3362_s4 + $0x230] sm:$0xff]  ;;  %v148_v54 = vld [vmem:[%s3362_s4 + $0x2e0] sm:$0xff]  ;;  %v151_v0 = vld [vmem:[%s3362_s4 + $0x348] sm:$0xff] }
  0x2f   :  { %v1828_v55 = vpack.c.bf16 %v143_v52, %v141_v51  ;;  %v152_v60 = vld [vmem:[%s3362_s4 + $0x350] sm:$0xff]  ;;  %v154_v1 = vld [vmem:[%s3362_s4 + $0x388] sm:$0xff]  ;;  %v153_v5 = vld [vmem:[%s3362_s4 + $0x380] sm:$0xff]  ;;  %v1009_v51 = vlaneseq }
  0x30   :  { %v155_v6 = vld [vmem:[%s3362_s4 + $0x3b8] sm:$0xff]  ;;  %v160_v10 = vld [vmem:[%s3362_s4 + $0x430] sm:$0xff]  ;;  %v162_v15 = vld [vmem:[%s3362_s4 + $0x468] sm:$0xff] }
  0x31   :  { %v158_v9 = vld [vmem:[%s3362_s4 + $0x3f8] sm:$0xff]  ;;  %v164_v16 = vld [vmem:[%s3362_s4 + $0x4a0] sm:$0xff]  ;;  %v168_v22 = vld [vmem:[%s3362_s4 + $0x510] sm:$0xff] }
  0x32   :  { %v1846_v17 = vpack.c.bf16 %v164_v16, %v162_v15  ;;  %v163_v19 = vld [vmem:[%s3362_s4 + $0x498] sm:$0xff]  ;;  %v170_v27 = vld [vmem:[%s3362_s4 + $0x548] sm:$0xff]  ;;  %v172_v28 = vld [vmem:[%s3362_s4 + $0x580] sm:$0xff] }
  0x33   :  { %v166_v21 = vld [vmem:[%s3362_s4 + $0x4d8] sm:$0xff]  ;;  %v176_v34 = vld [vmem:[%s3362_s4 + $0x5f0] sm:$0xff]  ;;  %v178_v39 = vld [vmem:[%s3362_s4 + $0x628] sm:$0xff] }
  0x34   :  { %v1850_v23 = vpack.c.bf16 %v168_v22, %v166_v21  ;;  %v171_v31 = vld [vmem:[%s3362_s4 + $0x578] sm:$0xff]  ;;  %v180_v40 = vld [vmem:[%s3362_s4 + $0x660] sm:$0xff]  ;;  %v184_v46 = vld [vmem:[%s3362_s4 + $0x6d0] sm:$0xff] }
  0x35   :  { %v174_v33 = vld [vmem:[%s3362_s4 + $0x5b8] sm:$0xff]  ;;  %v1862_v41 = vpack.c.bf16 %v180_v40, %v178_v39  ;;  %v177_v42 = vld [vmem:[%s3362_s4 + $0x620] sm:$0xff]  ;;  %v181_v48 = vld [vmem:[%s3362_s4 + $0x690] sm:$0xff] }
  0x36   :  { %v182_v45 = vld [vmem:[%s3362_s4 + $0x698] sm:$0xff] }
  0x37   :  { %v1866_v47 = vpack.c.bf16 %v184_v46, %v182_v45 }
  0xfc   :  { %v577_v53 = vpop.f32.mrb[4].mxu0 }
  0xfd   :  { %v648_v56 = vpop.f32.mrb[4].mxu1  ;;  %v579_v57 = vpop.f32.mrb[5].mxu0 }
  0xfe   :  { %v650_v62 = vpop.f32.mrb[5].mxu1  ;;  %1658 = vmatprep.subr.msk.mxu0 %vm660_vm1, %v579_v57  ;;  %v145_v57 = vld [vmem:[%s3362_s4 + $0x2a0] sm:$0xff] }
  0xff   :  { %1662 = vmatprep.subr.msk.mxu1 %vm660_vm1, %v650_v62  ;;  %1659 = vmatpush1.msk.msra.mxu0 %vm660_vm1, %v577_v53  ;;  %v146_v53 = vld [vmem:[%s3362_s4 + $0x2a8] sm:$0xff] }
 0x100   :  { %1663 = vmatpush1.msk.msra.mxu1 %vm660_vm1, %v648_v56  ;;  %1660 = vmatmul.mubr.msk.f32.vlgmr.msra.gmra.mrb[0].mxu0 %vm653_vm2, %v112_v58  ;;  %v1830_v56 = vpack.c.bf16 %v148_v54, %v146_v53  ;;  %v2764_v53 = vshrl.u32 %v1009_v51, 7  ;;  %v185_v51 = vld [vmem:[%s3362_s4 + $0x10] sm:$0xff] }
 0x101   :  { %1664 = vmatmul.mubr.msk.f32.vlgmr.msra.gmra.mrb[0].mxu1 %vm653_vm2, %v112_v58  ;;  %1791 = vmatprep.subr.bf16.mxu0 %v1790_v59  ;;  %v147_v58 = vld [vmem:[%s3362_s4 + $0x2d8] sm:$0xff] }
 0x102   :  { %1793 = vmatpush1.bf16.msra.mxu0 %v1792_v63  ;;  %743 = vmatprep.mubr.f32.mxu0 %v2216_v7  ;;  %v150_v59 = vld [vmem:[%s3362_s4 + $0x318] sm:$0xff]  ;;  %v1832_v61 = vpack.c.bf16 %v147_v58, %v145_v57  ;;  %v149_v63 = vld [vmem:[%s3362_s4 + $0x310] sm:$0xff]  ;;  %v1011_v58 = vsub.s32 0, %v2764_v53 }
 0x103   :  { %820 = vmatprep.mubr.f32.mxu1 %v2216_v7  ;;  %1795 = vmatprep.subr.bf16.mxu0 %v1794_v2  ;;  %v1834_v62 = vpack.c.bf16 %v152_v60, %v150_v59  ;;  %v156_v2 = vld [vmem:[%s3362_s4 + $0x3c0] sm:$0xff]  ;;  %v1836_v3 = vpack.c.bf16 %v151_v0, %v149_v63 }
 0x104   :  { %1661 = vmatmul.mubr.msk.f32.gmra.mrb[2].mxu0 %vm653_vm2, %v113_v11  ;;  %1871 = vmatprep.subr.bf16.mxu1 %v1806_v8  ;;  %v1838_v4 = vpack.c.bf16 %v156_v2, %v154_v1 }
 0x105   :  { %1665 = vmatmul.mubr.msk.f32.gmra.mrb[2].mxu1 %vm653_vm2, %v113_v11  ;;  %898 = vmatprep.mubr.f32.mxu0 %v2216_v7  ;;  %v1842_v11 = vpack.c.bf16 %v160_v10, %v158_v9 }
 0x106   :  { %1797 = vmatpush1.bf16.msra.mxu0 %v1796_v12  ;;  %1873 = vmatpush1.bf16.msra.mxu1 %v1808_v13  ;;  %v157_v12 = vld [vmem:[%s3362_s4 + $0x3f0] sm:$0xff] }
 0x107   :  { %1799 = vmatprep.subr.bf16.mxu0 %v1798_v14  ;;  %1875 = vmatprep.subr.bf16.mxu1 %v1810_v18 }
 0x109   :  { %1666 = vmatmul.mubr.msk.f32.vlgmr.msra.gmra.mrb[6].mxu0 %vm827_vm3, %v348_v24 }
 0x10a   :  { %904 = vmatprep.mubr.f32.mxu0 %v2216_v7  ;;  %1801 = vmatpush1.bf16.msra.mxu0 %v1800_v25  ;;  %v167_v25 = vld [vmem:[%s3362_s4 + $0x508] sm:$0xff] }
 0x10b   :  { %1803 = vmatprep.subr.bf16.mxu0 %v1802_v26  ;;  %1877 = vmatpush1.bf16.msra.mxu1 %v1812_v29 }
 0x10c   :  { %1879 = vmatprep.subr.bf16.mxu1 %v1814_v30 }
 0x10d   :  { %1667 = vmatmul.mubr.msk.f32.gmra.mrb[8].mxu0 %vm827_vm3, %v349_v35 }
 0x10e   :  { %1805 = vmatpush1.bf16.msra.mxu0 %v1804_v36  ;;  %975 = vmatprep.mubr.f32.mxu0 %v2216_v7  ;;  %v173_v36 = vld [vmem:[%s3362_s4 + $0x5b0] sm:$0xff] }
 0x10f   :  { %1807 = vmatprep.subr.bf16.mxu0 %v1806_v8  ;;  %1881 = vmatpush1.bf16.msra.mxu1 %v1816_v37  ;;  %v1840_v8 = vpack.c.bf16 %v155_v6, %v153_v5 }
 0x110   :  { %1883 = vmatprep.subr.bf16.mxu1 %v1818_v38 }
 0x111   :  { %1668 = vmatmul.mubr.msk.f32.vlgmr.msra.gmra.mrb[10].mxu0 %vm827_vm3, %v348_v24  ;;  %v165_v24 = vld [vmem:[%s3362_s4 + $0x4d0] sm:$0xff] }
 0x112   :  { %981 = vmatprep.mubr.f32.mxu0 %v2216_v7  ;;  %1809 = vmatpush1.bf16.msra.mxu0 %v1808_v13  ;;  %v159_v13 = vld [vmem:[%s3362_s4 + $0x428] sm:$0xff]  ;;  %v1852_v26 = vpack.c.bf16 %v167_v25, %v165_v24 }
 0x113   :  { %1811 = vmatprep.subr.bf16.mxu0 %v1810_v18  ;;  %1885 = vmatpush1.bf16.msra.mxu1 %v1820_v43  ;;  %v1844_v14 = vpack.c.bf16 %v159_v13, %v157_v12  ;;  %v161_v18 = vld [vmem:[%s3362_s4 + $0x460] sm:$0xff] }
 0x114   :  { %1887 = vmatprep.subr.bf16.mxu1 %v1822_v44  ;;  %v1848_v20 = vpack.c.bf16 %v163_v19, %v161_v18 }
 0x115   :  { %1669 = vmatmul.mubr.msk.f32.gmra.mrb[12].mxu0 %vm827_vm3, %v349_v35  ;;  %v1858_v35 = vpack.c.bf16 %v176_v34, %v174_v33 }
 0x116   :  { %1813 = vmatpush1.bf16.msra.mxu0 %v1812_v29  ;;  %v1854_v29 = vpack.c.bf16 %v172_v28, %v170_v27 }
 0x117   :  { %1815 = vmatprep.subr.bf16.mxu0 %v1814_v30  ;;  %1889 = vmatpush1.bf16.msra.mxu1 %v1824_v49  ;;  %v169_v30 = vld [vmem:[%s3362_s4 + $0x540] sm:$0xff] }
 0x118   :  { %1891 = vmatprep.subr.bf16.mxu1 %v1826_v50  ;;  %v1856_v32 = vpack.c.bf16 %v171_v31, %v169_v30 }
 0x11a   :  { %1817 = vmatpush1.bf16.msra.mxu0 %v1816_v37  ;;  %v175_v37 = vld [vmem:[%s3362_s4 + $0x5e8] sm:$0xff] }
 0x11b   :  { %1819 = vmatprep.subr.bf16.mxu0 %v1818_v38  ;;  %1893 = vmatpush1.bf16.msra.mxu1 %v1828_v55  ;;  %v1860_v38 = vpack.c.bf16 %v175_v37, %v173_v36 }
 0x11c   :  { %1895 = vmatprep.subr.bf16.mxu1 %v1830_v56 }
 0x11e   :  { %1821 = vmatpush1.bf16.msra.mxu0 %v1820_v43  ;;  %v179_v43 = vld [vmem:[%s3362_s4 + $0x658] sm:$0xff] }
 0x11f   :  { %1823 = vmatprep.subr.bf16.mxu0 %v1822_v44  ;;  %1897 = vmatpush1.bf16.msra.mxu1 %v1832_v61  ;;  %v1864_v44 = vpack.c.bf16 %v179_v43, %v177_v42 }
 0x120   :  { %1899 = vmatprep.subr.bf16.mxu1 %v1834_v62 }
 0x122   :  { %1825 = vmatpush1.bf16.msra.mxu0 %v1824_v49  ;;  %v183_v49 = vld [vmem:[%s3362_s4 + $0x6c8] sm:$0xff] }
 0x123   :  { %1827 = vmatprep.subr.bf16.mxu0 %v1826_v50  ;;  %1901 = vmatpush1.bf16.msra.mxu1 %v1836_v3  ;;  %v1868_v50 = vpack.c.bf16 %v183_v49, %v181_v48  ;;  %v186_v49 = vld [vmem:[%s3362_s4 + $0x18] sm:$0xff] }
 0x124   :  { %1903 = vmatprep.subr.bf16.mxu1 %v1838_v4 }
 0x126   :  { %1829 = vmatpush1.bf16.msra.mxu0 %v1828_v55 }
 0x127   :  { %1831 = vmatprep.subr.bf16.mxu0 %v1830_v56  ;;  %1905 = vmatpush1.bf16.msra.mxu1 %v1840_v8 }
 0x128   :  { %1907 = vmatprep.subr.bf16.mxu1 %v1842_v11 }
 0x12a   :  { %1833 = vmatpush1.bf16.msra.mxu0 %v1832_v61  ;;  %v1652_v61 = vld [vmem:[%s3361_s3 + $0x2d0] ss:$8 sm:$0x3] }
 0x12b   :  { %1835 = vmatprep.subr.bf16.mxu0 %v1834_v62  ;;  %1909 = vmatpush1.bf16.msra.mxu1 %v1844_v14  ;;  %v1015_v62 = vsub.s32 1, %v2764_v53  ;;  %v1012_v0 = vrot.slane %v1652_v61, %v1011_v58 }
 0x12c   :  { %1911 = vmatprep.subr.bf16.mxu1 %v1846_v17 }
 0x12d   :  { %v1016_v2 = vrot.slane %v1652_v61, %v1015_v62  ;;  %v191_v61 = vld [vmem:[%s3362_s4 + $0xb8] sm:$0xff] }
 0x12e   :  { %1837 = vmatpush1.bf16.msra.mxu0 %v1836_v3 }
 0x12f   :  { %1839 = vmatprep.subr.bf16.mxu0 %v1838_v4  ;;  %1913 = vmatpush1.bf16.msra.mxu1 %v1848_v20 }
 0x130   :  { %1915 = vmatprep.subr.bf16.mxu1 %v1850_v23 }
 0x132   :  { %1841 = vmatpush1.bf16.msra.mxu0 %v1840_v8 }
 0x133   :  { %1843 = vmatprep.subr.bf16.mxu0 %v1842_v11  ;;  %1917 = vmatpush1.bf16.msra.mxu1 %v1852_v26 }
 0x134   :  { %1919 = vmatprep.subr.bf16.mxu1 %v1854_v29 }
 0x136   :  { %1845 = vmatpush1.bf16.msra.mxu0 %v1844_v14 }
 0x137   :  { %1847 = vmatprep.subr.bf16.mxu0 %v1846_v17  ;;  %1921 = vmatpush1.bf16.msra.mxu1 %v1856_v32 }
 0x138   :  { %1923 = vmatprep.subr.bf16.mxu1 %v1858_v35 }
 0x13a   :  { %1849 = vmatpush1.bf16.msra.mxu0 %v1848_v20 }
 0x13b   :  { %1851 = vmatprep.subr.bf16.mxu0 %v1850_v23  ;;  %1925 = vmatpush1.bf16.msra.mxu1 %v1860_v38 }
 0x13c   :  { %1927 = vmatprep.subr.bf16.mxu1 %v1862_v41 }
 0x13e   :  { %1853 = vmatpush1.bf16.msra.mxu0 %v1852_v26 }
 0x13f   :  { %1855 = vmatprep.subr.bf16.mxu0 %v1854_v29  ;;  %1929 = vmatpush1.bf16.msra.mxu1 %v1864_v44 }
 0x140   :  { %1931 = vmatprep.subr.bf16.mxu1 %v1866_v47 }
 0x142   :  { %1857 = vmatpush1.bf16.msra.mxu0 %v1856_v32 }
 0x143   :  { %1859 = vmatprep.subr.bf16.mxu0 %v1858_v35  ;;  %1933 = vmatpush1.bf16.msra.mxu1 %v1868_v50 }
 0x146   :  { %1861 = vmatpush1.bf16.msra.mxu0 %v1860_v38 }
 0x147   :  { %1863 = vmatprep.subr.bf16.mxu0 %v1862_v41 }
 0x14a   :  { %1865 = vmatpush1.bf16.msra.mxu0 %v1864_v44 }
 0x14b   :  { %1867 = vmatprep.subr.bf16.mxu0 %v1866_v47 }
 0x14e   :  { %1869 = vmatpush1.bf16.msra.mxu0 %v1868_v50  ;;  %v188_v50 = vld [vmem:[%s3362_s4 + $0x50] sm:$0xff] }
 0x1d3   :  { %v739_v52 = vpop.f32.mrb[0].mxu0 }
 0x1d4   :  { %v816_v54 = vpop.f32.mrb[0].mxu1  ;;  %v741_v55 = vpop.f32.mrb[1].mxu0 }
 0x1d5   :  { %v818_v56 = vpop.f32.mrb[1].mxu1 }
 0x1d7   :  { %v745_v57 = vpop.f32.mrb[2].mxu0 }
 0x1d8   :  { %v822_v59 = vpop.f32.mrb[2].mxu1  ;;  %v747_v60 = vpop.f32.mrb[3].mxu0 }
 0x1d9   :  { %v824_v63 = vpop.f32.mrb[3].mxu1 }
 0x1dc   :  { %v900_v1 = vpop.f32.mrb[6].mxu0 }
 0x1dd   :  { %v1004_v3 = vadd.f32 %v900_v1, %v739_v52  ;;  %v1027_v4 = vadd.f32 %v900_v1, %v816_v54  ;;  %v902_v5 = vpop.f32.mrb[7].mxu0  ;;  %v1934_v52 = vpack.c.bf16 %v188_v50, %v186_v49  ;;  %v187_v54 = vld [vmem:[%s3362_s4 + $0x48] sm:$0xff]  ;;  %v221_v50 = vld [vmem:[%s3362_s4 + $0x400] sm:$0xff] }
 0x1de   :  { %v1005_v6 = vadd.f32 %v902_v5, %v741_v55  ;;  %v1028_v8 = vadd.f32 %v902_v5, %v818_v56  ;;  %v190_v55 = vld [vmem:[%s3362_s4 + $0x88] sm:$0xff]  ;;  %v192_v56 = vld [vmem:[%s3362_s4 + $0xc0] sm:$0xff] }
 0x1df   :  { %v1019_v9 = vadd.f32 %v1012_v0, %v1004_v3  ;;  %v1031_v10 = vadd.f32 %v1027_v4, %v1012_v0  ;;  %1935 = vmatprep.subr.bf16.mxu1 %v1934_v52  ;;  %v193_v3 = vld [vmem:[%s3362_s4 + $0xf0] sm:$0xff]  ;;  %v195_v4 = vld [vmem:[%s3362_s4 + $0x128] sm:$0xff]  ;;  %v226_v52 = vld [vmem:[%s3362_s4 + $0x478] sm:$0xff] }
 0x1e0   :  { %v1020_v11 = vadd.f32 %v1016_v2, %v1005_v6  ;;  %v1032_v12 = vadd.f32 %v1028_v8, %v1016_v2  ;;  %v906_v13 = vpop.f32.mrb[8].mxu0  ;;  %v198_v5 = vld [vmem:[%s3362_s4 + $0x168] sm:$0xff]  ;;  %v200_v6 = vld [vmem:[%s3362_s4 + $0x1a0] sm:$0xff]  ;;  %v1944_v8 = vpack.c.bf16 %v195_v4, %v193_v3  ;;  %v234_v4 = vld [vmem:[%s3362_s4 + $0x558] sm:$0xff] }
 0x1e1   :  { %2120 = vtanh.f32 %v1019_v9  ;;  %v1006_v14 = vadd.f32 %v906_v13, %v745_v57  ;;  %v1029_v15 = vadd.f32 %v906_v13, %v822_v59  ;;  %v908_v16 = vpop.f32.mrb[9].mxu0  ;;  %v1936_v57 = vpack.c.bf16 %v187_v54, %v185_v51  ;;  %v204_v13 = vld [vmem:[%s3362_s4 + $0x210] sm:$0xff]  ;;  %v223_v51 = vld [vmem:[%s3362_s4 + $0x438] sm:$0xff] }
 0x1e2   :  { %2122 = vtanh.f32 %v1031_v10  ;;  %v1007_v17 = vadd.f32 %v908_v16, %v747_v60  ;;  %v1030_v18 = vadd.f32 %v908_v16, %v824_v63  ;;  %v1938_v59 = vpack.c.bf16 %v192_v56, %v190_v55  ;;  %v189_v60 = vld [vmem:[%s3362_s4 + $0x80] sm:$0xff]  ;;  %v194_v63 = vld [vmem:[%s3362_s4 + $0xf8] sm:$0xff]  ;;  %v201_v16 = vld [vmem:[%s3362_s4 + $0x1d0] sm:$0xff] }
 0x1e3   :  { %2124 = vtanh.f32 %v1020_v11  ;;  %v1021_v19 = vadd.f32 %v1012_v0, %v1006_v14  ;;  %v1033_v20 = vadd.f32 %v1029_v15, %v1012_v0  ;;  %v196_v0 = vld [vmem:[%s3362_s4 + $0x130] sm:$0xff]  ;;  %v1940_v1 = vpack.c.bf16 %v191_v61, %v189_v60  ;;  %v197_v10 = vld [vmem:[%s3362_s4 + $0x160] sm:$0xff]  ;;  %v199_v11 = vld [vmem:[%s3362_s4 + $0x198] sm:$0xff] }
 0x1e4   :  { %2126 = vtanh.f32 %v1032_v12  ;;  %v1022_v21 = vadd.f32 %v1016_v2, %v1007_v17  ;;  %v1034_v22 = vadd.f32 %v1030_v18, %v1016_v2  ;;  %v977_v23 = vpop.f32.mrb[10].mxu0  ;;  %v1942_v2 = vpack.c.bf16 %v196_v0, %v194_v63  ;;  %v202_v12 = vld [vmem:[%s3362_s4 + $0x1d8] sm:$0xff]  ;;  %v203_v17 = vld [vmem:[%s3362_s4 + $0x208] sm:$0xff]  ;;  %v228_v54 = vld [vmem:[%s3362_s4 + $0x4b0] sm:$0xff] }
 0x1e5   :  { %2128 = vtanh.f32 %v1021_v19  ;;  %vm988_vm4 = vcmp.ne.f32.partialorder %v977_v23, 0.0  ;;  %v979_v24 = vpop.f32.mrb[11].mxu0  ;;  %v1946_v9 = vpack.c.bf16 %v200_v6, %v198_v5  ;;  %v1948_v14 = vpack.c.bf16 %v199_v11, %v197_v10  ;;  %v206_v18 = vld [vmem:[%s3362_s4 + $0x248] sm:$0xff]  ;;  %v208_v19 = vld [vmem:[%s3362_s4 + $0x280] sm:$0xff]  ;;  %v207_v23 = vld [vmem:[%s3362_s4 + $0x278] sm:$0xff] }
 0x1e6   :  { %2130 = vtanh.f32 %v1033_v20  ;;  %v2776_v25 = vsel %vm988_vm4, 1.0, %v2216_v7  ;;  %vm989_vm5 = vcmp.ne.f32.partialorder %v979_v24, 0.0  ;;  %v1950_v15 = vpack.c.bf16 %v204_v13, %v202_v12  ;;  %v210_v24 = vld [vmem:[%s3362_s4 + $0x2b8] sm:$0xff]  ;;  %v230_v60 = vld [vmem:[%s3362_s4 + $0x4e8] sm:$0xff]  ;;  %v232_v61 = vld [vmem:[%s3362_s4 + $0x520] sm:$0xff] }
 0x1e7   :  { %2132 = vtanh.f32 %v1022_v21  ;;  %v2779_v26 = vsel %vm989_vm5, 1.0, %v2216_v7  ;;  %v1952_v20 = vpack.c.bf16 %v203_v17, %v201_v16  ;;  %v1954_v21 = vpack.c.bf16 %v208_v19, %v206_v18  ;;  %v236_v5 = vld [vmem:[%s3362_s4 + $0x590] sm:$0xff]  ;;  %v238_v11 = vld [vmem:[%s3362_s4 + $0x5c8] sm:$0xff]  ;;  %v240_v12 = vld [vmem:[%s3362_s4 + $0x600] sm:$0xff] }
 0x1e8   :  { %2134 = vtanh.f32 %v1034_v22  ;;  %v983_v27 = vpop.f32.mrb[12].mxu0  ;;  %v1216_v28 = vadd.f32 %v2779_v26, %v2776_v25  ;;  %v205_v22 = vld [vmem:[%s3362_s4 + $0x240] sm:$0xff]  ;;  %v1972_v55 = vpack.c.bf16 %v223_v51, %v221_v50  ;;  %v1974_v56 = vpack.c.bf16 %v228_v54, %v226_v52  ;;  %v242_v17 = vld [vmem:[%s3362_s4 + $0x638] sm:$0xff]  ;;  %v244_v18 = vld [vmem:[%s3362_s4 + $0x670] sm:$0xff] }
 0x1e9   :  { %vm990_vm6 = vcmp.ne.f32.partialorder %v983_v27, 0.0  ;;  %v985_v29 = vpop.f32.mrb[13].mxu0  ;;  %v212_v27 = vld [vmem:[%s3362_s4 + $0x2f0] sm:$0xff]  ;;  %v1978_v0 = vpack.c.bf16 %v232_v61, %v230_v60  ;;  %v1982_v6 = vpack.c.bf16 %v236_v5, %v234_v4  ;;  %v1986_v13 = vpack.c.bf16 %v240_v12, %v238_v11  ;;  %v251_v11 = vld [vmem:[%s3362_s4 + $0x58] sm:$0xff] }
 0x1ea   :  { %v2784_v30 = vsel %vm990_vm6, 1.0, %v2216_v7  ;;  %vm991_vm7 = vcmp.ne.f32.partialorder %v985_v29, 0.0  ;;  %1217 = vadd.xlane.f32.xlu0 %v1216_v28  ;;  %v1956_v28 = vpack.c.bf16 %v207_v23, %v205_v22  ;;  %v1958_v29 = vpack.c.bf16 %v212_v27, %v210_v24  ;;  %v241_v19 = vld [vmem:[%s3362_s4 + $0x630] sm:$0xff]  ;;  %v246_v22 = vld [vmem:[%s3362_s4 + $0x6a8] sm:$0xff]  ;;  %v248_v23 = vld [vmem:[%s3362_s4 + $0x6e0] sm:$0xff] }
 0x1eb   :  { %v2121_v31 = vpop.eup %2120  ;;  %v2787_v32 = vsel %vm991_vm7, 1.0, %v2216_v7  ;;  %v1994_v27 = vpack.c.bf16 %v248_v23, %v246_v22  ;;  %v254_v12 = vld [vmem:[%s3362_s4 + $0x98] sm:$0xff] }
 0x1ec   :  { %v2123_v33 = vpop.eup %2122  ;;  %v1219_v34 = vadd.f32 %v2787_v32, %v2784_v30  ;;  %v1039_v39 = vmul.f32 %v2121_v31, %v2776_v25  ;;  %v209_v31 = vld [vmem:[%s3362_s4 + $0x2b0] sm:$0xff] }
 0x1ed   :  { %v2125_v35 = vpop.eup %2124  ;;  %v1047_v42 = vmul.f32 %v2123_v33, %v2776_v25  ;;  %v211_v33 = vld [vmem:[%s3362_s4 + $0x2e8] sm:$0xff] }
 0x1ee   :  { %v2127_v36 = vpop.eup %2126  ;;  %v1040_v37 = vmul.f32 %v2125_v35, %v2779_v26  ;;  %1220 = vadd.xlane.f32.xlu0 %v1219_v34  ;;  %v214_v34 = vld [vmem:[%s3362_s4 + $0x328] sm:$0xff]  ;;  %v216_v35 = vld [vmem:[%s3362_s4 + $0x360] sm:$0xff] }
 0x1ef   :  { %v2129_v38 = vpop.eup %2128  ;;  %v1048_v40 = vmul.f32 %v2127_v36, %v2779_v26  ;;  %v1960_v36 = vpack.c.bf16 %v211_v33, %v209_v31  ;;  %v1653_v33 = vld [vmem:[%s3361_s3 + $0x2d1] ss:$8 sm:$0x3] }
 0x1f0   :  { %v2131_v41 = vpop.eup %2130  ;;  %1126 = vmatprep.mubr.f32.mxu0 %v1040_v37  ;;  %v1041_v47 = vmul.f32 %v2129_v38, %v2784_v30  ;;  %v1962_v37 = vpack.c.bf16 %v216_v35, %v214_v34  ;;  %v213_v38 = vld [vmem:[%s3362_s4 + $0x320] sm:$0xff]  ;;  %v1055_v34 = vrot.slane %v1653_v33, %v1011_v58  ;;  %v1059_v35 = vrot.slane %v1653_v33, %v1015_v62 }
 0x1f1   :  { %v2133_v43 = vpop.eup %2132  ;;  %1203 = vmatprep.mubr.f32.mxu1 %v1048_v40  ;;  %1127 = vmatmul.mubr.f32.vlgmr.msra.gmra.mrb[14].mxu0 %v1039_v39  ;;  %v1049_v48 = vmul.f32 %v2131_v41, %v2784_v30  ;;  %v215_v39 = vld [vmem:[%s3362_s4 + $0x358] sm:$0xff]  ;;  %v220_v41 = vld [vmem:[%s3362_s4 + $0x3d0] sm:$0xff] }
 0x1f2   :  { %v2135_v44 = vpop.eup %2134  ;;  %1204 = vmatmul.mubr.f32.vlgmr.msra.gmra.mrb[6].mxu1 %v1047_v42  ;;  %v1042_v45 = vmul.f32 %v2133_v43, %v2787_v32  ;;  %v218_v40 = vld [vmem:[%s3362_s4 + $0x398] sm:$0xff]  ;;  %v1964_v42 = vpack.c.bf16 %v215_v39, %v213_v38 }
 0x1f3   :  { %v1050_v46 = vmul.f32 %v2135_v44, %v2787_v32  ;;  %1937 = vmatpush1.bf16.msra.mxu1 %v1936_v57  ;;  %v1966_v43 = vpack.c.bf16 %v220_v41, %v218_v40  ;;  %v217_v44 = vld [vmem:[%s3362_s4 + $0x390] sm:$0xff] }
 0x1f4   :  { %1132 = vmatprep.mubr.f32.mxu0 %v1042_v45  ;;  %1939 = vmatprep.subr.bf16.mxu1 %v1938_v59  ;;  %v219_v45 = vld [vmem:[%s3362_s4 + $0x3c8] sm:$0xff]  ;;  %v225_v57 = vld [vmem:[%s3362_s4 + $0x470] sm:$0xff] }
 0x1f5   :  { %1209 = vmatprep.mubr.f32.mxu1 %v1050_v46  ;;  %1133 = vmatmul.mubr.f32.gmra.mrb[16].mxu0 %v1041_v47  ;;  %v222_v46 = vld [vmem:[%s3362_s4 + $0x408] sm:$0xff]  ;;  %v224_v47 = vld [vmem:[%s3362_s4 + $0x440] sm:$0xff] }
 0x1f6   :  { %1210 = vmatmul.mubr.f32.gmra.mrb[8].mxu1 %v1049_v48  ;;  %1395 = vmatprep.mubr.f32.mxu0 %v2216_v7  ;;  %v1968_v48 = vpack.c.bf16 %v219_v45, %v217_v44  ;;  %v1970_v49 = vpack.c.bf16 %v224_v47, %v222_v46  ;;  %v227_v59 = vld [vmem:[%s3362_s4 + $0x4a8] sm:$0xff] }
 0x1f7   :  { %1941 = vmatpush1.bf16.msra.mxu1 %v1940_v1  ;;  %v1976_v63 = vpack.c.bf16 %v227_v59, %v225_v57  ;;  %v229_v1 = vld [vmem:[%s3362_s4 + $0x4e0] sm:$0xff] }
 0x1f8   :  { %1943 = vmatprep.subr.bf16.mxu1 %v1942_v2  ;;  %v231_v2 = vld [vmem:[%s3362_s4 + $0x518] sm:$0xff] }
 0x1f9   :  { %v1980_v3 = vpack.c.bf16 %v231_v2, %v229_v1  ;;  %v250_v2 = vld [vmem:[%s3362_s4 + $0x28] sm:$0xff] }
 0x1fb   :  { %1945 = vmatpush1.bf16.msra.mxu1 %v1944_v8  ;;  %v233_v8 = vld [vmem:[%s3362_s4 + $0x550] sm:$0xff] }
 0x1fc   :  { %1947 = vmatprep.subr.bf16.mxu1 %v1946_v9  ;;  %v235_v9 = vld [vmem:[%s3362_s4 + $0x588] sm:$0xff] }
 0x1fd   :  { %v1984_v10 = vpack.c.bf16 %v235_v9, %v233_v8 }
 0x1ff   :  { %1949 = vmatpush1.bf16.msra.mxu1 %v1948_v14  ;;  %v237_v14 = vld [vmem:[%s3362_s4 + $0x5c0] sm:$0xff] }
 0x200   :  { %1951 = vmatprep.subr.bf16.mxu1 %v1950_v15  ;;  %v239_v15 = vld [vmem:[%s3362_s4 + $0x5f8] sm:$0xff] }
 0x201   :  { %v1988_v16 = vpack.c.bf16 %v239_v15, %v237_v14  ;;  %v114_v14 = vld [vmem:[%s3361_s3 + $0x2c8] sm:$0xff] }
 0x203   :  { %1953 = vmatpush1.bf16.msra.mxu1 %v1952_v20  ;;  %v1990_v20 = vpack.c.bf16 %v244_v18, %v242_v17  ;;  %v253_v17 = vld [vmem:[%s3362_s4 + $0x90] sm:$0xff]  ;;  %v255_v18 = vld [vmem:[%s3362_s4 + $0xc8] sm:$0xff] }
 0x204   :  { %1955 = vmatprep.subr.bf16.mxu1 %v1954_v21  ;;  %v243_v21 = vld [vmem:[%s3362_s4 + $0x668] sm:$0xff]  ;;  %v2008_v22 = vpack.c.bf16 %v255_v18, %v253_v17  ;;  %v289_v17 = vld [vmem:[%s3362_s4 + $0x480] sm:$0xff]  ;;  %v291_v18 = vld [vmem:[%s3362_s4 + $0x4b8] sm:$0xff] }
 0x205   :  { %v1992_v24 = vpack.c.bf16 %v243_v21, %v241_v19  ;;  %v258_v19 = vld [vmem:[%s3362_s4 + $0x108] sm:$0xff] }
 0x206   :  { %v115_v21 = vld [vmem:[%s3361_s3 + $0x2e8] sm:$0xff] }
 0x207   :  { %1957 = vmatpush1.bf16.msra.mxu1 %v1956_v28  ;;  %v245_v28 = vld [vmem:[%s3362_s4 + $0x6a0] sm:$0xff] }
 0x208   :  { %1959 = vmatprep.subr.bf16.mxu1 %v1958_v29  ;;  %v247_v29 = vld [vmem:[%s3362_s4 + $0x6d8] sm:$0xff] }
 0x209   :  { %v1996_v31 = vpack.c.bf16 %v247_v29, %v245_v28  ;;  %v262_v28 = vld [vmem:[%s3362_s4 + $0x178] sm:$0xff]  ;;  %v264_v29 = vld [vmem:[%s3362_s4 + $0x1b0] sm:$0xff] }
 0x20a   :  { %v2014_v33 = vpack.c.bf16 %v264_v29, %v262_v28  ;;  %v300_v28 = vld [vmem:[%s3362_s4 + $0x5a0] sm:$0xff] }
 0x20b   :  { %1961 = vmatpush1.bf16.msra.mxu1 %v1960_v36 }
 0x20c   :  { %1963 = vmatprep.subr.bf16.mxu1 %v1962_v37 }
 0x20f   :  { %1965 = vmatpush1.bf16.msra.mxu1 %v1964_v42 }
 0x210   :  { %1967 = vmatprep.subr.bf16.mxu1 %v1966_v43 }
 0x213   :  { %1969 = vmatpush1.bf16.msra.mxu1 %v1968_v48 }
 0x214   :  { %1971 = vmatprep.subr.bf16.mxu1 %v1970_v49 }
 0x217   :  { %1973 = vmatpush1.bf16.msra.mxu1 %v1972_v55 }
 0x218   :  { %1975 = vmatprep.subr.bf16.mxu1 %v1974_v56 }
 0x21b   :  { %1977 = vmatpush1.bf16.msra.mxu1 %v1976_v63 }
 0x21c   :  { %1979 = vmatprep.subr.bf16.mxu1 %v1978_v0 }
 0x21f   :  { %1981 = vmatpush1.bf16.msra.mxu1 %v1980_v3  ;;  %v252_v3 = vld [vmem:[%s3362_s4 + $0x60] sm:$0xff] }
 0x220   :  { %1983 = vmatprep.subr.bf16.mxu1 %v1982_v6  ;;  %v2002_v9 = vpack.c.bf16 %v252_v3, %v250_v2 }
 0x223   :  { %1985 = vmatpush1.bf16.msra.mxu1 %v1984_v10  ;;  %v249_v10 = vld [vmem:[%s3362_s4 + $0x20] sm:$0xff] }
 0x224   :  { %1987 = vmatprep.subr.bf16.mxu1 %v1986_v13  ;;  %v256_v13 = vld [vmem:[%s3362_s4 + $0xd0] sm:$0xff]  ;;  %v2004_v15 = vpack.c.bf16 %v251_v11, %v249_v10 }
 0x225   :  { %v285_v11 = vld [vmem:[%s3362_s4 + $0x410] sm:$0xff] }
 0x227   :  { %1989 = vmatpush1.bf16.msra.mxu1 %v1988_v16  ;;  %v2006_v16 = vpack.c.bf16 %v256_v13, %v254_v12  ;;  %v287_v12 = vld [vmem:[%s3362_s4 + $0x448] sm:$0xff] }
 0x228   :  { %1991 = vmatprep.subr.bf16.mxu1 %v1990_v20  ;;  %v260_v20 = vld [vmem:[%s3362_s4 + $0x140] sm:$0xff]  ;;  %v290_v13 = vld [vmem:[%s3362_s4 + $0x488] sm:$0xff] }
 0x229   :  { %v2010_v23 = vpack.c.bf16 %v260_v20, %v258_v19  ;;  %v294_v19 = vld [vmem:[%s3362_s4 + $0x4f8] sm:$0xff]  ;;  %v296_v20 = vld [vmem:[%s3362_s4 + $0x530] sm:$0xff] }
 0x22b   :  { %1993 = vmatpush1.bf16.msra.mxu1 %v1992_v24  ;;  %v257_v24 = vld [vmem:[%s3362_s4 + $0x100] sm:$0xff] }
 0x22c   :  { %1995 = vmatprep.subr.bf16.mxu1 %v1994_v27  ;;  %v259_v27 = vld [vmem:[%s3362_s4 + $0x138] sm:$0xff] }
 0x22f   :  { %1997 = vmatpush1.bf16.msra.mxu1 %v1996_v31  ;;  %v2012_v31 = vpack.c.bf16 %v259_v27, %v257_v24  ;;  %v295_v24 = vld [vmem:[%s3362_s4 + $0x528] sm:$0xff] }
 0x230   :  { %v298_v27 = vld [vmem:[%s3362_s4 + $0x568] sm:$0xff] }
 0x2c4   :  { %v1128_v36 = vpop.f32.mrb[14].mxu0 }
 0x2c5   :  { %v2999_v37 = vadd.f32 %v1128_v36, %v1055_v34  ;;  %v1130_v38 = vpop.f32.mrb[15].mxu0  ;;  %v266_v36 = vld [vmem:[%s3362_s4 + $0x1e8] sm:$0xff] }
 0x2c6   :  { %v3001_v39 = vadd.f32 %v1130_v38, %v1059_v35  ;;  %v268_v38 = vld [vmem:[%s3362_s4 + $0x220] sm:$0xff] }
 0x2c7   :  { %2136 = vtanh.f32 %v2999_v37 }
 0x2c8   :  { %2138 = vtanh.f32 %v3001_v39  ;;  %v1134_v40 = vpop.f32.mrb[16].mxu0 }
 0x2c9   :  { %v3005_v41 = vadd.f32 %v1134_v40, %v1055_v34  ;;  %v1136_v42 = vpop.f32.mrb[17].mxu0 }
 0x2ca   :  { %v3007_v43 = vadd.f32 %v1136_v42, %v1059_v35  ;;  %v2018_v42 = vpack.c.bf16 %v268_v38, %v266_v36  ;;  %v304_v36 = vld [vmem:[%s3362_s4 + $0x610] sm:$0xff] }
 0x2cb   :  { %2140 = vtanh.f32 %v3005_v41 }
 0x2cc   :  { %2142 = vtanh.f32 %v3007_v43 }
 0x2d1   :  { %v2137_v53 = vpop.eup %2136 }
 0x2d2   :  { %v2139_v58 = vpop.eup %2138  ;;  %v1232_v44 = vmul.f32 %v2137_v53, %v2776_v25  ;;  %v265_v53 = vld [vmem:[%s3362_s4 + $0x1e0] sm:$0xff] }
 0x2d3   :  { %v1233_v62 = vmul.f32 %v2139_v58, %v2779_v26  ;;  %v267_v58 = vld [vmem:[%s3362_s4 + $0x218] sm:$0xff] }
 0x2d5   :  { %v2141_v45 = vpop.eup %2140  ;;  %1300 = vmatprep.mubr.f32.mxu1 %v1233_v62  ;;  %v270_v62 = vld [vmem:[%s3362_s4 + $0x258] sm:$0xff] }
 0x2d6   :  { %v2143_v46 = vpop.eup %2142  ;;  %1301 = vmatmul.mubr.f32.vlgmr.msra.gmra.mrb[6].mxu1 %v1232_v44  ;;  %v1234_v48 = vmul.f32 %v2141_v45, %v2784_v30  ;;  %v272_v44 = vld [vmem:[%s3362_s4 + $0x290] sm:$0xff]  ;;  %v2020_v45 = vpack.c.bf16 %v267_v58, %v265_v53  ;;  %v303_v53 = vld [vmem:[%s3362_s4 + $0x608] sm:$0xff] }
 0x2d7   :  { %v1235_v47 = vmul.f32 %v2143_v46, %v2787_v32  ;;  %v2022_v46 = vpack.c.bf16 %v272_v44, %v270_v62  ;;  %v306_v58 = vld [vmem:[%s3362_s4 + $0x648] sm:$0xff]  ;;  %v308_v62 = vld [vmem:[%s3362_s4 + $0x680] sm:$0xff] }
 0x2d9   :  { %1306 = vmatprep.mubr.f32.mxu1 %v1235_v47  ;;  %v269_v47 = vld [vmem:[%s3362_s4 + $0x250] sm:$0xff] }
 0x2da   :  { %1307 = vmatmul.mubr.f32.gmra.mrb[8].mxu1 %v1234_v48  ;;  %v271_v48 = vld [vmem:[%s3362_s4 + $0x288] sm:$0xff] }
 0x3a9   :  { %v1302_v49 = vpop.f32.mrb[6].mxu1 }
 0x3aa   :  { %v2098_v50 = vadd.f32 %v1302_v49, %v1055_v34  ;;  %v1304_v51 = vpop.f32.mrb[7].mxu1  ;;  %v274_v49 = vld [vmem:[%s3362_s4 + $0x2c8] sm:$0xff] }
 0x3ab   :  { %v2099_v52 = vadd.f32 %v1304_v51, %v1059_v35  ;;  %v2024_v51 = vpack.c.bf16 %v271_v48, %v269_v47  ;;  %v307_v47 = vld [vmem:[%s3362_s4 + $0x678] sm:$0xff] }
 0x3ac   :  { %2144 = vtanh.f32 %v2098_v50  ;;  %v276_v50 = vld [vmem:[%s3362_s4 + $0x300] sm:$0xff]  ;;  %v310_v48 = vld [vmem:[%s3362_s4 + $0x6b8] sm:$0xff] }
 0x3ad   :  { %v1308_v54 = vpop.f32.mrb[8].mxu1  ;;  %2146 = vtanh.f32 %v2099_v52  ;;  %v2026_v52 = vpack.c.bf16 %v276_v50, %v274_v49  ;;  %v312_v49 = vld [vmem:[%s3362_s4 + $0x6f0] sm:$0xff] }
 0x3ae   :  { %v2100_v55 = vadd.f32 %v1308_v54, %v1055_v34  ;;  %v1310_v56 = vpop.f32.mrb[9].mxu1  ;;  %v261_v34 = vld [vmem:[%s3362_s4 + $0x170] sm:$0xff]  ;;  %v273_v54 = vld [vmem:[%s3362_s4 + $0x2c0] sm:$0xff] }
 0x3af   :  { %v2101_v57 = vadd.f32 %v1310_v56, %v1059_v35  ;;  %v263_v35 = vld [vmem:[%s3362_s4 + $0x1a8] sm:$0xff]  ;;  %v278_v56 = vld [vmem:[%s3362_s4 + $0x338] sm:$0xff] }
 0x3b0   :  { %2148 = vtanh.f32 %v2100_v55  ;;  %v2016_v40 = vpack.c.bf16 %v263_v35, %v261_v34  ;;  %v275_v55 = vld [vmem:[%s3362_s4 + $0x2f8] sm:$0xff] }
 0x3b1   :  { %2150 = vtanh.f32 %v2101_v57  ;;  %v280_v57 = vld [vmem:[%s3362_s4 + $0x370] sm:$0xff]  ;;  %v299_v34 = vld [vmem:[%s3362_s4 + $0x598] sm:$0xff] }
 0x3b2   :  { %v302_v35 = vld [vmem:[%s3362_s4 + $0x5d8] sm:$0xff] }
 0x3b6   :  { %v2145_v59 = vpop.eup %2144 }
 0x3b7   :  { %v2147_v60 = vpop.eup %2146  ;;  %v1321_v0 = vmul.f32 %v2145_v59, %v2776_v25  ;;  %v2028_v59 = vpack.c.bf16 %v275_v55, %v273_v54  ;;  %v311_v54 = vld [vmem:[%s3362_s4 + $0x6e8] sm:$0xff] }
 0x3b8   :  { %v1322_v4 = vmul.f32 %v2147_v60, %v2779_v26  ;;  %v2030_v60 = vpack.c.bf16 %v280_v57, %v278_v56  ;;  %v329_v56 = vld [vmem:[%s3362_s4 + $0x3b0] sm:$0xff]  ;;  %v330_v57 = vld [vmem:[%s3362_s4 + $0x3e8] sm:$0xff] }
 0x3ba   :  { %v2149_v61 = vpop.eup %2148 }
 0x3bb   :  { %v2151_v63 = vpop.eup %2150  ;;  %v1323_v1 = vmul.f32 %v2149_v61, %v2784_v30  ;;  %v277_v61 = vld [vmem:[%s3362_s4 + $0x330] sm:$0xff] }
 0x3bc   :  { %v1324_v5 = vmul.f32 %v2151_v63, %v2787_v32  ;;  %v279_v63 = vld [vmem:[%s3362_s4 + $0x368] sm:$0xff] }
 0x3bd   :  { %v2000_v6 = vpack.c.bf16 %v1323_v1, %v1321_v0  ;;  %v282_v0 = vld [vmem:[%s3362_s4 + $0x3a8] sm:$0xff]  ;;  %v284_v1 = vld [vmem:[%s3362_s4 + $0x3e0] sm:$0xff]  ;;  %v2032_v2 = vpack.c.bf16 %v279_v63, %v277_v61 }
 0x3be   :  { %v1998_v8 = vpack.c.bf16 %v1324_v5, %v1322_v4  ;;  %v2034_v3 = vpack.c.bf16 %v284_v1, %v282_v0  ;;  %v281_v4 = vld [vmem:[%s3362_s4 + $0x3a0] sm:$0xff]  ;;  %v283_v5 = vld [vmem:[%s3362_s4 + $0x3d8] sm:$0xff]  ;;  %v314_v61 = vld [vmem:[%s3362_s4 + $0x68] sm:$0xff] }
 0x3bf   :  { %v331_v63 = vld [vmem:[%s3362_s4 + $0x420] sm:$0xff]  ;;  %v332_v0 = vld [vmem:[%s3362_s4 + $0x458] sm:$0xff] }
 0x3c0   :  { %1999 = vmatprep.subr.bf16.mxu0 %v1998_v8  ;;  %v288_v8 = vld [vmem:[%s3362_s4 + $0x450] sm:$0xff] }
 0x3c1   :  { %2001 = vmatpush1.bf16.msra.mxu0 %v2000_v6  ;;  %v286_v6 = vld [vmem:[%s3362_s4 + $0x418] sm:$0xff] }
 0x3c2   :  { %2003 = vmatprep.subr.bf16.mxu0 %v2002_v9  ;;  %v2036_v9 = vpack.c.bf16 %v283_v5, %v281_v4  ;;  %v2038_v10 = vpack.c.bf16 %v288_v8, %v286_v6  ;;  %v316_v4 = vld [vmem:[%s3362_s4 + $0xd8] sm:$0xff]  ;;  %v333_v5 = vld [vmem:[%s3362_s4 + $0x490] sm:$0xff]  ;;  %v334_v6 = vld [vmem:[%s3362_s4 + $0x4c8] sm:$0xff] }
 0x3c4   :  { %1676 = vmatmul.mubr.msk.f32.vlgmr.msra.gmra.mrb[18].mxu0 %vm350_vm0, %v114_v14  ;;  %v292_v14 = vld [vmem:[%s3362_s4 + $0x4c0] sm:$0xff] }
 0x3c5   :  { %1401 = vmatprep.mubr.f32.mxu0 %v2216_v7  ;;  %2005 = vmatpush1.bf16.msra.mxu0 %v2004_v15  ;;  %v2040_v15 = vpack.c.bf16 %v287_v12, %v285_v11  ;;  %v318_v11 = vld [vmem:[%s3362_s4 + $0x148] sm:$0xff]  ;;  %v335_v12 = vld [vmem:[%s3362_s4 + $0x500] sm:$0xff] }
 0x3c6   :  { %2007 = vmatprep.subr.bf16.mxu0 %v2006_v16  ;;  %v2042_v16 = vpack.c.bf16 %v292_v14, %v290_v13  ;;  %v336_v13 = vld [vmem:[%s3362_s4 + $0x538] sm:$0xff] }
 0x3c8   :  { %1677 = vmatmul.mubr.msk.f32.gmra.mrb[20].mxu0 %vm350_vm0, %v115_v21  ;;  %v2044_v21 = vpack.c.bf16 %v291_v18, %v289_v17  ;;  %v320_v17 = vld [vmem:[%s3362_s4 + $0x1b8] sm:$0xff] }
 0x3c9   :  { %2009 = vmatpush1.bf16.msra.mxu0 %v2008_v22  ;;  %v2046_v22 = vpack.c.bf16 %v296_v20, %v294_v19 }
 0x3ca   :  { %2011 = vmatprep.subr.bf16.mxu0 %v2010_v23  ;;  %v293_v23 = vld [vmem:[%s3362_s4 + $0x4f0] sm:$0xff] }
 0x3cb   :  { %v2048_v29 = vpack.c.bf16 %v295_v24, %v293_v23  ;;  %v337_v23 = vld [vmem:[%s3362_s4 + $0x570] sm:$0xff]  ;;  %v338_v24 = vld [vmem:[%s3362_s4 + $0x5a8] sm:$0xff] }
 0x3cd   :  { %2013 = vmatpush1.bf16.msra.mxu0 %v2012_v31  ;;  %v2050_v31 = vpack.c.bf16 %v300_v28, %v298_v27  ;;  %v2082_v27 = vpack.c.bf16 %v338_v24, %v337_v23  ;;  %v321_v28 = vld [vmem:[%s3362_s4 + $0x1f0] sm:$0xff] }
 0x3ce   :  { %2015 = vmatprep.subr.bf16.mxu0 %v2014_v33  ;;  %v297_v33 = vld [vmem:[%s3362_s4 + $0x560] sm:$0xff] }
 0x3cf   :  { %v2052_v38 = vpack.c.bf16 %v299_v34, %v297_v33  ;;  %v339_v33 = vld [vmem:[%s3362_s4 + $0x5e0] sm:$0xff]  ;;  %v340_v34 = vld [vmem:[%s3362_s4 + $0x618] sm:$0xff] }
 0x3d1   :  { %2017 = vmatpush1.bf16.msra.mxu0 %v2016_v40  ;;  %v2054_v40 = vpack.c.bf16 %v304_v36, %v302_v35  ;;  %v2086_v35 = vpack.c.bf16 %v340_v34, %v339_v33  ;;  %v323_v36 = vld [vmem:[%s3362_s4 + $0x260] sm:$0xff] }
 0x3d2   :  { %2019 = vmatprep.subr.bf16.mxu0 %v2018_v42  ;;  %v301_v42 = vld [vmem:[%s3362_s4 + $0x5d0] sm:$0xff] }
 0x3d3   :  { %v2056_v44 = vpack.c.bf16 %v303_v53, %v301_v42  ;;  %v341_v42 = vld [vmem:[%s3362_s4 + $0x650] sm:$0xff]  ;;  %v342_v53 = vld [vmem:[%s3362_s4 + $0x688] sm:$0xff] }
 0x3d5   :  { %2021 = vmatpush1.bf16.msra.mxu0 %v2020_v45  ;;  %v2058_v45 = vpack.c.bf16 %v308_v62, %v306_v58  ;;  %v325_v58 = vld [vmem:[%s3362_s4 + $0x2d0] sm:$0xff]  ;;  %v2090_v62 = vpack.c.bf16 %v342_v53, %v341_v42 }
 0x3d6   :  { %2023 = vmatprep.subr.bf16.mxu0 %v2022_v46  ;;  %v305_v46 = vld [vmem:[%s3362_s4 + $0x640] sm:$0xff] }
 0x3d7   :  { %v2060_v50 = vpack.c.bf16 %v307_v47, %v305_v46  ;;  %v344_v46 = vld [vmem:[%s3362_s4 + $0x6f8] sm:$0xff] }
 0x3d9   :  { %2025 = vmatpush1.bf16.msra.mxu0 %v2024_v51  ;;  %v2062_v51 = vpack.c.bf16 %v312_v49, %v310_v48  ;;  %v327_v49 = vld [vmem:[%s3362_s4 + $0x340] sm:$0xff] }
 0x3da   :  { %2027 = vmatprep.subr.bf16.mxu0 %v2026_v52  ;;  %v309_v52 = vld [vmem:[%s3362_s4 + $0x6b0] sm:$0xff] }
 0x3db   :  { %v2064_v55 = vpack.c.bf16 %v311_v54, %v309_v52 }
 0x3dd   :  { %2029 = vmatpush1.bf16.msra.mxu0 %v2028_v59  ;;  %v313_v59 = vld [vmem:[%s3362_s4 + $0x30] sm:$0xff] }
 0x3de   :  { %2031 = vmatprep.subr.bf16.mxu0 %v2030_v60  ;;  %v2066_v60 = vpack.c.bf16 %v330_v57, %v329_v56  ;;  %v2068_v1 = vpack.c.bf16 %v314_v61, %v313_v59 }
 0x3e0   :  { %2067 = vmatprep.subr.bf16.mxu1 %v2066_v60 }
 0x3e1   :  { %2033 = vmatpush1.bf16.msra.mxu0 %v2032_v2  ;;  %v2070_v2 = vpack.c.bf16 %v332_v0, %v331_v63  ;;  %2069 = vmatpush3.bf16.msra.mxu1 %v2068_v1 }
 0x3e2   :  { %2035 = vmatprep.subr.bf16.mxu0 %v2034_v3  ;;  %v315_v3 = vld [vmem:[%s3362_s4 + $0xa0] sm:$0xff] }
 0x3e3   :  { %v2072_v8 = vpack.c.bf16 %v316_v4, %v315_v3  ;;  %2071 = vmatprep.subr.bf16.mxu1 %v2070_v2 }
 0x3e5   :  { %2037 = vmatpush1.bf16.msra.mxu0 %v2036_v9  ;;  %v2074_v9 = vpack.c.bf16 %v334_v6, %v333_v5  ;;  %2073 = vmatpush3.bf16.msra.mxu1 %v2072_v8 }
 0x3e6   :  { %2039 = vmatprep.subr.bf16.mxu0 %v2038_v10  ;;  %v317_v10 = vld [vmem:[%s3362_s4 + $0x110] sm:$0xff] }
 0x3e7   :  { %v2076_v14 = vpack.c.bf16 %v318_v11, %v317_v10  ;;  %2075 = vmatprep.subr.bf16.mxu1 %v2074_v9 }
 0x3e9   :  { %2041 = vmatpush1.bf16.msra.mxu0 %v2040_v15  ;;  %v2078_v15 = vpack.c.bf16 %v336_v13, %v335_v12  ;;  %2077 = vmatpush3.bf16.msra.mxu1 %v2076_v14 }
 0x3ea   :  { %2043 = vmatprep.subr.bf16.mxu0 %v2042_v16  ;;  %v319_v16 = vld [vmem:[%s3362_s4 + $0x180] sm:$0xff] }
 0x3eb   :  { %v2080_v18 = vpack.c.bf16 %v320_v17, %v319_v16  ;;  %2079 = vmatprep.subr.bf16.mxu1 %v2078_v15  ;;  %v1218_v15 = vpop.xlane.xlu0 %1217 }
 0x3ec   :  { %vm1222_vm8 = vcmp.gt.f32.partialorder %v1218_v15, 0.0 }
 0x3ed   :  { %2045 = vmatpush1.bf16.msra.mxu0 %v2044_v21  ;;  %2081 = vmatpush3.bf16.msra.mxu1 %v2080_v18 }
 0x3ee   :  { %2047 = vmatprep.subr.bf16.mxu0 %v2046_v22  ;;  %2083 = vmatprep.subr.bf16.mxu1 %v2082_v27 }
 0x3ef   :  { %v1221_v17 = vpop.xlane.xlu0 %1220 }
 0x3f0   :  { %vm1223_vm10 = vcmp.gt.f32.partialorder %v1221_v17, 0.0 }
 0x3f1   :  { %2049 = vmatpush1.bf16.msra.mxu0 %v2048_v29  ;;  %v322_v29 = vld [vmem:[%s3362_s4 + $0x228] sm:$0xff] }
 0x3f2   :  { %2051 = vmatprep.subr.bf16.mxu0 %v2050_v31  ;;  %v2084_v31 = vpack.c.bf16 %v322_v29, %v321_v28  ;;  %v1675_v28 = vsel %vm1223_vm10, 1.0, %v2216_v7 }
 0x3f4   :  { %2085 = vmatpush3.bf16.msra.mxu1 %v2084_v31 }
 0x3f5   :  { %2053 = vmatpush1.bf16.msra.mxu0 %v2052_v38  ;;  %v324_v38 = vld [vmem:[%s3362_s4 + $0x298] sm:$0xff]  ;;  %2087 = vmatprep.subr.bf16.mxu1 %v2086_v35 }
 0x3f6   :  { %2055 = vmatprep.subr.bf16.mxu0 %v2054_v40  ;;  %v2088_v40 = vpack.c.bf16 %v324_v38, %v323_v36 }
 0x3f8   :  { %2089 = vmatpush3.bf16.msra.mxu1 %v2088_v40 }
 0x3f9   :  { %2057 = vmatpush1.bf16.msra.mxu0 %v2056_v44  ;;  %v326_v44 = vld [vmem:[%s3362_s4 + $0x308] sm:$0xff]  ;;  %2091 = vmatprep.subr.bf16.mxu1 %v2090_v62 }
 0x3fa   :  { %2059 = vmatprep.subr.bf16.mxu0 %v2058_v45  ;;  %v343_v45 = vld [vmem:[%s3362_s4 + $0x6c0] sm:$0xff]  ;;  %v2092_v47 = vpack.c.bf16 %v326_v44, %v325_v58 }
 0x3fb   :  { %v2094_v48 = vpack.c.bf16 %v344_v46, %v343_v45 }
 0x3fc   :  { %2093 = vmatpush3.bf16.msra.mxu1 %v2092_v47 }
 0x3fd   :  { %2061 = vmatpush1.bf16.msra.mxu0 %v2060_v50  ;;  %v328_v50 = vld [vmem:[%s3362_s4 + $0x378] sm:$0xff]  ;;  %2095 = vmatprep.subr.bf16.mxu1 %v2094_v48 }
 0x3fe   :  { %2063 = vmatprep.subr.bf16.mxu0 %v2062_v51  ;;  %v2096_v51 = vpack.c.bf16 %v328_v50, %v327_v49 }
 0x400   :  { %2097 = vmatpush3.bf16.msra.mxu1 %v2096_v51 }
 0x401   :  { %2065 = vmatpush1.bf16.msra.mxu0 %v2064_v55 }
 0x497   :  { %v1397_v19 = vpop.f32.mrb[18].mxu0 }
 0x498   :  { %v1399_v20 = vpop.f32.mrb[19].mxu0 }
 0x499   :  { %1472 = vmatprep.mubr.f32.mxu0 %v1399_v20  ;;  %v1674_v20 = vsel %vm1222_vm8, 1.0, %v2216_v7 }
 0x49a   :  { %1473 = vmatmul.mubr.f32.vlgmr.msra.gmra.mrb[22].mxu0 %v1397_v19 }
 0x49b   :  { %v1403_v21 = vpop.f32.mrb[20].mxu0 }
 0x49c   :  { %v1405_v22 = vpop.f32.mrb[21].mxu0 }
 0x49d   :  { %1478 = vmatprep.mubr.f32.mxu0 %v1405_v22 }
 0x49e   :  { %1479 = vmatmul.mubr.f32.gmra.mrb[24].mxu0 %v1403_v21 }
 0x56d   :  { %v1474_v52 = vpop.f32.mrb[22].mxu0 }
 0x56e   :  { %v1485_v54 = vadd.f32 %v1474_v52, %v2999_v37  ;;  %v1476_v55 = vpop.f32.mrb[23].mxu0 }
 0x56f   :  { %v1486_v56 = vadd.f32 %v1476_v55, %v3001_v39 }
 0x570   :  { %2152 = vtanh.f32 %v1485_v54 }
 0x571   :  { %2154 = vtanh.f32 %v1486_v56  ;;  %v1480_v57 = vpop.f32.mrb[24].mxu0 }
 0x572   :  { %v1487_v59 = vadd.f32 %v1480_v57, %v3005_v41  ;;  %v1482_v60 = vpop.f32.mrb[25].mxu0 }
 0x573   :  { %v1488_v61 = vadd.f32 %v1482_v60, %v3007_v43  ;;  %v120_v43 = vld [vmem:[%s3361_s3 + $0x2d2] ss:$0 sm:$0xff]  ;;  %s2218_s3 = smov [#allocation2]  }
 0x574   :  { %2156 = vtanh.f32 %v1487_v59  ;;  %s1627_s14 = sshll.u32 %s2218_s3, 4  ;;  %s1628_s14 = int_to_ptr.vmem [resolvable:$true] %s1627_s14 }
 0x575   :  { %2158 = vtanh.f32 %v1488_v61  ;;  %s2168_s15 = scalar_lea.vmem %s1628_s14, 256  ;;  %p2173_p1 = scmp.lt.s32.totalorder %s1628_s14, %s1628_s14 }
 0x576   :  { %p2169_p0 = scmp.ne.s32.totalorder %s1628_s14, %s2168_s15  ;;  %p2174_p2 = scmp.lt.s32.totalorder %s2168_s15, %s2168_s15 }
 0x578   :  { %p2175_p3 = por %p2174_p2, %p2173_p1 }
 0x57a   :  { %v2153_v63 = vpop.eup %2152  ;;  %p2176_p4 = pnand %p2175_p3, %p2169_p0 }
 0x57b   :  { %v2155_v0 = vpop.eup %2154  ;;  %v1493_v2 = vmul.f32 %v2153_v63, %v2776_v25 }
 0x57c   :  { %v1494_v1 = vmul.f32 %v2155_v0, %v2779_v26 }
 0x57e   :  { %v2157_v37 = vpop.eup %2156  ;;  %1561 = vmatprep.mubr.f32.mxu1 %v1494_v1 }
 0x57f   :  { %v2159_v3 = vpop.eup %2158  ;;  %1562 = vmatmul.mubr.f32.vlgmr.msra.gmra.mrb[10].mxu1 %v1493_v2  ;;  %v1495_v4 = vmul.f32 %v2157_v37, %v2784_v30 }
 0x580   :  { %v1496_v39 = vmul.f32 %v2159_v3, %v2787_v32 }
 0x582   :  { %1566 = vmatprep.mubr.f32.mxu1 %v1496_v39 }
 0x583   :  { %1567 = vmatmul.mubr.f32.gmra.mrb[12].mxu1 %v1495_v4 }
 0x652   :  { %v1712_v41 = vpop.f32.mrb[10].mxu1 }
 0x653   :  { %v1713_v5 = vpop.f32.mrb[11].mxu1 }
 0x654   :  { %v1714_v6 = vadd.f32 %v1713_v5, %v1712_v41 }
 0x656   :  { %v1564_v26 = vadd.f32 %v1714_v6, %v120_v43  ;;  %v1715_v8 = vpop.f32.mrb[12].mxu1 }
 0x657   :  { %v1716_v25 = vpop.f32.mrb[13].mxu1 }
 0x658   :  { %1611 = vst.msk [vmem:[#allocation2] sm:$0xff] %vm827_vm3, %v1564_v26  ;;  %v1717_v9 = vadd.f32 %v1716_v25, %v1715_v8  ;;  %1586 = vrot.lane.b32.xlu1 %v1564_v26, %s2217_s13  ;;  %v1678_v30 = vmul.f32 -1.442695, %v1564_v26 }
 0x65a   :  { %v1569_v32 = vadd.f32 %v1717_v9, %v120_v43  ;;  %2160 = vpow2.f32 %v1678_v30 }
 0x65c   :  { %1612 = vst.msk [vmem:[#allocation2 + $0x8] sm:$0xff] %vm827_vm3, %v1569_v32  ;;  %1588 = vrot.lane.b32.xlu1 %v1569_v32, %s2217_s13  ;;  %v1679_v10 = vmul.f32 -1.442695, %v1569_v32 }
 0x65e   :  { %2162 = vpow2.f32 %v1679_v10 }
 0x664   :  { %v2161_v11 = vpop.eup %2160 }
 0x665   :  { %v1578_v12 = vadd.f32 1.0, %v2161_v11 }
 0x667   :  { %2164 = vrcp.f32 %v1578_v12 }
 0x668   :  { %v2163_v13 = vpop.eup %2162 }
 0x669   :  { %v1579_v14 = vadd.f32 1.0, %v2163_v13 }
 0x66b   :  { %2166 = vrcp.f32 %v1579_v14 }
 0x671   :  { %v2165_v16 = vpop.eup %2164 }
 0x675   :  { %v2167_v22 = vpop.eup %2166 }
 0x6ca   :  { %v1587_v18 = vpop.permute.xlu1 %1586 }
 0x6cb   :  { %v1592_v19 = vmul.f32 %v2165_v16, %v1587_v18 }
 0x6cd   :  { %v1594_v21 = vmul.f32 %v1674_v20, %v1592_v19 }
 0x6ce   :  { %v1589_v23 = vpop.permute.xlu1 %1588 }
 0x6cf   :  { %v1597_v24 = vsel %vm1596_vm9, %v1594_v21, 0.0  ;;  %v1593_v27 = vmul.f32 %v2167_v22, %v1589_v23 }
 0x6d0   :  { %v1598_v29 = vrot.slane %v1597_v24, 4 }
 0x6d1   :  { %v1595_v31 = vmul.f32 %v1675_v28, %v1593_v27 }
 0x6d2   :  { %v1599_v33 = vadd.f32 %v1598_v29, %v1597_v24 }
 0x6d3   :  { %v1604_v34 = vsel %vm1596_vm9, %v1595_v31, 0.0 }
 0x6d4   :  { %v1600_v35 = vrot.slane %v1599_v33, 2  ;;  %v1605_v36 = vrot.slane %v1604_v34, 4 }
 0x6d6   :  { %v1601_v38 = vadd.f32 %v1600_v35, %v1599_v33  ;;  %v1606_v40 = vadd.f32 %v1605_v36, %v1604_v34 }
 0x6d7   :  { %2179 = shalt.err (!%p2176_p4)
}
 0x6d8   :  { %s2180_s18 = scalar_lea.hbm %s3363_s5, 256 }
 0x6d9   :  { %p2181_p5 = scmp.ne.s32.totalorder %s3363_s5, %s2180_s18  ;;  %p2184_p6 = scmp.lt.u32.totalorder %s2180_s18, %s3363_s5 }
 0x6db   :  { %p2186_p7 = pnand %p2184_p6, %p2181_p5 }
 0x6dd   :  { %2189 = shalt.err (!%p2186_p7)
}
 0x6de   :  { %s2219_s22 = smov 128   ;;  %s2220_s0 = smov 8   ;;  %v1607_v7 = vrot.slane %v1606_v40, 2  ;;  %v1602_v53 = vrot.slane %v1601_v38, 1  ;;  %vm1615_vm11 = vcmask 1041409   ;;  %vm1620_vm12 = vcmask 254976  }
 0x6df   :  { %1633 = dma.vmem_to_hbm [thread:$0]  %s1628_s14, 256, %s3363_s5, [#allocation3], %s2219_s22, %s2219_s22, %s2220_s0  }
 0x6e0   :  { %v1608_v42 = vadd.f32 %v1607_v7, %v1606_v40  ;;  %v1603_v62 = vadd.f32 %v1602_v53, %v1601_v38  ;;  %s2221_s25 = smov [#allocation4]  }
 0x6e1   :  { %s1640_s26 = sshll.u32 %s2221_s25, 4  ;;  %s1641_s26 = int_to_ptr.vmem [resolvable:$true] %s1640_s26 }
 0x6e2   :  { %v1609_v58 = vrot.slane %v1608_v42, 1  ;;  %s2190_s27 = scalar_lea.vmem %s1641_s26, 32  ;;  %p2195_p9 = scmp.lt.s32.totalorder %s1641_s26, %s1641_s26 }
 0x6e3   :  { %p2191_p8 = scmp.ne.s32.totalorder %s1641_s26, %s2190_s27  ;;  %p2196_p10 = scmp.lt.s32.totalorder %s2190_s27, %s2190_s27 }
 0x6e4   :  { %v1610_v44 = vadd.f32 %v1609_v58, %v1608_v42 }
 0x6e5   :  { %p2197_p11 = por %p2196_p10, %p2195_p9 }
 0x6e6   :  { %v1616_v45 = vsel %vm1615_vm11, %v1610_v44, %v1603_v62 }
 0x6e7   :  { %1617 = vrot.lane.b32.xlu0 %v1616_v45, %s2217_s13  ;;  %p2198_p12 = pnand %p2197_p11, %p2191_p8 }
 0x759   :  { %v1618_v46 = vpop.permute.xlu0 %1617 }
 0x75a   :  { %1621 = vst.msk [vmem:[#allocation4] sm:$0x3] %vm1620_vm12, %v1618_v46 }
 0x75b   :  { %2201 = shalt.err (!%p2198_p12)
}
 0x75c   :  { %s2202_s29 = scalar_lea.hbm %s3364_s6, 32 }
 0x75d   :  { %p2203_p13 = scmp.ne.s32.totalorder %s3364_s6, %s2202_s29  ;;  %p2206_p0 = scmp.lt.u32.totalorder %s2202_s29, %s3364_s6 }
 0x75f   :  { %p2208_p1 = pnand %p2206_p0, %p2203_p13 }
 0x761   :  { %2211 = shalt.err (!%p2208_p1)
}
 0x762   :  { %1643 = dma.vmem_to_hbm [thread:$0]  %s1641_s26, 32, %s3364_s6, [#allocation5]  }
 0x763   :  { %2212 = dma.done.wait [#allocation3], 256  }
 0x764   :  { %2213 = vsyncadd [#allocation3], 4294967040 }
 0x765   :  { %2214 = dma.done.wait [#allocation5], 32  }
 0x766   :  { %2215 = vsyncadd [#allocation5], 4294967264 }
 0x767   :  { %1650 = vsyncpa [#allocation3], 1 }
 0x768   :  { %1651 = vsyncpa [#allocation5], 1 }

</bundles_post_ra>
